<compile_context>
chip_gen: v5e
topology: v5e:2x2
jax: 0.10.0
libtpu: 0.0.40
codegen_flags: <defaults>
</compile_context>

<pallas_src>
import functools

import jax
import jax.numpy as jnp
from jax.experimental import pallas as pl
from jax.experimental.pallas import tpu as pltpu

F32 = jnp.float32
BF16 = jnp.bfloat16
LN_EPS = 1e-5
VMEM_LIMIT = 32 * 1024 * 1024


def _cparams(*dims):
    return pltpu.CompilerParams(dimension_semantics=dims,
                                vmem_limit_bytes=VMEM_LIMIT)


# ----------------------------------------------------------------------------
# Kernels
# ----------------------------------------------------------------------------

def _layernorm_f32(x, g, b):
    mean = jnp.mean(x, axis=-1, keepdims=True)
    var = jnp.mean(jnp.square(x - mean), axis=-1, keepdims=True)
    return (x - mean) * jax.lax.rsqrt(var + LN_EPS) * g + b


def _ln_qkv_kernel(x_ref, g_ref, b_ref, wq_ref, wk_ref, wv_ref,
                   q_ref, k_ref, v_ref):
    # LayerNorm in f32 (once per row block: column tile = full inner dim),
    # then bf16 matmuls with f32 accumulation.
    x = x_ref[...].astype(F32)
    xn = _layernorm_f32(x, g_ref[...], b_ref[...]).astype(BF16)
    q_ref[...] = jnp.dot(xn, wq_ref[...], preferred_element_type=F32).astype(q_ref.dtype)
    k_ref[...] = jnp.dot(xn, wk_ref[...], preferred_element_type=F32).astype(k_ref.dtype)
    v_ref[...] = jnp.dot(xn, wv_ref[...], preferred_element_type=F32).astype(v_ref.dtype)


def _ln_ff_geglu_kernel(x_ref, g_ref, b_ref, wa_ref, ba_ref, wg_ref, bg_ref, o_ref):
    x = x_ref[...].astype(F32)
    xn = _layernorm_f32(x, g_ref[...], b_ref[...]).astype(BF16)
    a = jnp.dot(xn, wa_ref[...], preferred_element_type=F32) + ba_ref[...]
    g = jnp.dot(xn, wg_ref[...], preferred_element_type=F32) + bg_ref[...]
    # TODO(synk): exact (erf) GELU in PyTorch; tanh approximation here.
    o_ref[...] = (a * jax.nn.gelu(g, approximate=True)).astype(o_ref.dtype)


def _mm_bias_kernel(x_ref, w_ref, b_ref, o_ref):
    o_ref[...] = (jnp.dot(x_ref[...].astype(BF16), w_ref[...],
                          preferred_element_type=F32)
                  + b_ref[...]).astype(o_ref.dtype)


def _mm_bias_res_kernel(x_ref, w_ref, b_ref, r_ref, o_ref):
    # Residual add in f32, stored in the (bf16) residual-stream dtype.
    o_ref[...] = (jnp.dot(x_ref[...].astype(BF16), w_ref[...],
                          preferred_element_type=F32)
                  + b_ref[...] + r_ref[...].astype(F32)).astype(o_ref.dtype)


def _attn_kernel(q_ref, kt_ref, v_ref, o_ref, *, scale):
    # One (batch, head) pair per grid step.  K arrives pre-transposed (DH, S), so the
    # score matmul needs no in-kernel transpose; scale is applied to q (S*DH mults,
    # not S*S).  Softmax in f32, reciprocal on the EUP.
    q = (q_ref[0].astype(F32) * scale).astype(BF16)                 # (S, DH)
    s = jnp.dot(q, kt_ref[0], preferred_element_type=F32)           # (S, S)
    s = s - jnp.max(s, axis=-1, keepdims=True)
    p = jnp.exp(s)
    p = p * pl.reciprocal(jnp.sum(p, axis=-1, keepdims=True), approx=True)
    o_ref[0] = jnp.dot(p.astype(BF16), v_ref[0],
                       preferred_element_type=F32).astype(o_ref.dtype)


# ----------------------------------------------------------------------------
# Wrappers (tiling + pallas_call)
# ----------------------------------------------------------------------------

def _row_block(m):
    return min(m, 256)


def _col_block(n, pref=512):
    return min(n, pref)


def ln_qkv(x, ln_g, ln_b, wq, wk, wv):
    """Fused LayerNorm + Q/K/V projections.  x: (M, D) bf16 -> 3x (M, inner) bf16.

    Column tile = full inner dim so LN runs once per row block and the (D, N) weights
    are loaded once for the whole grid (weight-stationary).
    """
    M, D = x.shape
    N = wq.shape[1]
    bm = _row_block(M)
    grid = (pl.cdiv(M, bm),)
    vec_spec = pl.BlockSpec((1, D), lambda i: (0, 0))
    w_spec = pl.BlockSpec((D, N), lambda i: (0, 0))
    o_spec = pl.BlockSpec((bm, N), lambda i: (i, 0))
    out_sds = jax.ShapeDtypeStruct((M, N), BF16)
    return pl.pallas_call(
        _ln_qkv_kernel,
        out_shape=(out_sds, out_sds, out_sds),
        grid=grid,
        in_specs=[pl.BlockSpec((bm, D), lambda i: (i, 0)),
                  vec_spec, vec_spec, w_spec, w_spec, w_spec],
        out_specs=(o_spec, o_spec, o_spec),
        compiler_params=_cparams("parallel"),
    )(x, ln_g.reshape(1, D), ln_b.reshape(1, D), wq, wk, wv)


def ln_ff_geglu(x, ln_g, ln_b, wa, ba, wg, bg):
    """Fused LayerNorm + GEGLU projection.  x: (M, D) bf16 -> (M, ff_inner) bf16.

    Weight-stationary: columns outer, rows fastest, so each (D, tn) weight tile is
    DMA'd once and reused across all row blocks.
    """
    M, D = x.shape
    N = wa.shape[1]
    bm = _row_block(M)
    tn = _col_block(N)
    grid = (pl.cdiv(N, tn), pl.cdiv(M, bm))
    return pl.pallas_call(
        _ln_ff_geglu_kernel,
        out_shape=jax.ShapeDtypeStruct((M, N), BF16),
        grid=grid,
        in_specs=[
            pl.BlockSpec((bm, D), lambda j, i: (i, 0)),
            pl.BlockSpec((1, D), lambda j, i: (0, 0)),
            pl.BlockSpec((1, D), lambda j, i: (0, 0)),
            pl.BlockSpec((D, tn), lambda j, i: (0, j)),
            pl.BlockSpec((1, tn), lambda j, i: (0, j)),
            pl.BlockSpec((D, tn), lambda j, i: (0, j)),
            pl.BlockSpec((1, tn), lambda j, i: (0, j)),
        ],
        out_specs=pl.BlockSpec((bm, tn), lambda j, i: (i, j)),
        compiler_params=_cparams("parallel", "parallel"),
    )(x, ln_g.reshape(1, D), ln_b.reshape(1, D),
      wa, ba.reshape(1, N), wg, bg.reshape(1, N))


def linear(x, w, b, residual=None, out_dtype=BF16):
    """y = x @ w + b (+ residual), weight-stationary tiling (cols outer, rows fastest)."""
    M, K = x.shape
    N = w.shape[1]
    bm = _row_block(M)
    tn = _col_block(N)
    grid = (pl.cdiv(N, tn), pl.cdiv(M, bm))
    in_specs = [
        pl.BlockSpec((bm, K), lambda j, i: (i, 0)),
        pl.BlockSpec((K, tn), lambda j, i: (0, j)),
        pl.BlockSpec((1, tn), lambda j, i: (0, j)),
    ]
    args = [x, w, b.reshape(1, N)]
    kernel = _mm_bias_kernel
    if residual is not None:
        in_specs.append(pl.BlockSpec((bm, tn), lambda j, i: (i, j)))
        args.append(residual)
        kernel = _mm_bias_res_kernel
    return pl.pallas_call(
        kernel,
        out_shape=jax.ShapeDtypeStruct((M, N), out_dtype),
        grid=grid,
        in_specs=in_specs,
        out_specs=pl.BlockSpec((bm, tn), lambda j, i: (i, j)),
        compiler_params=_cparams("parallel", "parallel"),
    )(*args)


def attention(q, k, v, *, B, S, H, DH):
    """q, k, v: (B*S, H*DH) bf16 -> (B*S, H*DH) bf16; self-attention, one head per step."""
    inner = H * DH
    # Head split and K pre-transpose done in plain XLA (cheap relative to attention
    # compute; removes all in-kernel transposes and gives B*H parallel grid steps).
    q4 = jnp.transpose(q.reshape(B, S, H, DH), (0, 2, 1, 3)).reshape(B * H, S, DH)
    kt = jnp.transpose(k.reshape(B, S, H, DH), (0, 2, 3, 1)).reshape(B * H, DH, S)
    v4 = jnp.transpose(v.reshape(B, S, H, DH), (0, 2, 1, 3)).reshape(B * H, S, DH)
    kernel = functools.partial(_attn_kernel, scale=float(DH) ** -0.5)
    o = pl.pallas_call(
        kernel,
        out_shape=jax.ShapeDtypeStruct((B * H, S, DH), BF16),
        grid=(B * H,),
        in_specs=[pl.BlockSpec((1, S, DH), lambda b: (b, 0, 0)),
                  pl.BlockSpec((1, DH, S), lambda b: (b, 0, 0)),
                  pl.BlockSpec((1, S, DH), lambda b: (b, 0, 0))],
        out_specs=pl.BlockSpec((1, S, DH), lambda b: (b, 0, 0)),
        compiler_params=_cparams("parallel"),
    )(q4, kt, v4)
    return jnp.transpose(o.reshape(B, H, S, DH), (0, 2, 1, 3)).reshape(B * S, inner)


# ----------------------------------------------------------------------------
# Model glue (residual stream kept in bf16; reshapes/transposes in XLA)
# ----------------------------------------------------------------------------

def mha(x2, p, ln_g, ln_b, B, S, H, DH):
    """x2: residual stream (B*S, D) bf16; LN fused into the QKV kernel."""
    q, k, v = ln_qkv(x2, ln_g, ln_b, p["wq"], p["wk"], p["wv"])
    o = attention(q, k, v, B=B, S=S, H=H, DH=DH)
    return linear(o, p["wo"], p["bo"], residual=x2)


def transformer_block(x2, p, B, S, H, DH):
    # attn1 (self-attention) + residual
    x2 = mha(x2, p["attn1"], p["ln1_g"], p["ln1_b"], B, S, H, DH)
    # attn2 (no context -> self-attention) + residual
    x2 = mha(x2, p["attn2"], p["ln2_g"], p["ln2_b"], B, S, H, DH)
    # GEGLU feed-forward + residual (LN3 + FF1 + GEGLU fused)
    gated = ln_ff_geglu(x2, p["ln3_g"], p["ln3_b"],
                        p["ff_wa"], p["ff_ba"], p["ff_wg"], p["ff_bg"])
    x2 = linear(gated, p["ff_w2"], p["ff_b2"], residual=x2)
    return x2


def basic_transformer_forward(params, x, *, S, D, H, DH):
    x = x.reshape(-1, S, D).astype(F32)                     # x.view(-1, seq, d_model)
    B = x.shape[0]
    # Positional-encoding add in plain XLA (no standalone elementwise pallas_call),
    # then drop the residual stream to bf16.
    x = (x + params["pos_enc"][:S][None]).astype(BF16)
    x2 = x.reshape(B * S, D)
    for p in params["blocks_pre"]:
        x2 = transformer_block(x2, p, B, S, H, DH)
    x2 = linear(x2, params["w_down"], params["b_down"])     # Linear(D, latent)
    x2 = linear(x2, params["w_up"], params["b_up"])         # Linear(latent, D)
    for p in params["blocks_post"]:
        x2 = transformer_block(x2, p, B, S, H, DH)
    # flatten(start_dim=1, end_dim=2)
    return x2.reshape(B, S * D).astype(F32)


# ----------------------------------------------------------------------------
# Deterministic parameter init (weights stored in bf16 for the MXU)
# ----------------------------------------------------------------------------

def _init_w(key, din, dout):
    return (0.02 * jax.random.normal(key, (din, dout), F32)).astype(BF16)


def _init_b(key, dout):
    return 0.02 * jax.random.normal(key, (dout,), F32)


def _init_attn(key, D, H, DH):
    inner = H * DH
    kq, kk, kv, ko, kb = jax.random.split(key, 5)
    return dict(
        wq=_init_w(kq, D, inner),
        wk=_init_w(kk, D, inner),
        wv=_init_w(kv, D, inner),
        wo=_init_w(ko, inner, D),
        bo=_init_b(kb, D),
    )


def _init_block(key, D, H, DH):
    ff_inner = 4 * D
    ka1, ka2, kfa, kfg, kf2, kba, kbg, kb2 = jax.random.split(key, 8)
    ones = jnp.ones((D,), F32)
    zeros = jnp.zeros((D,), F32)
    return dict(
        ln1_g=ones, ln1_b=zeros,
        ln2_g=ones, ln2_b=zeros,
        ln3_g=ones, ln3_b=zeros,
        attn1=_init_attn(ka1, D, H, DH),
        attn2=_init_attn(ka2, D, H, DH),
        ff_wa=_init_w(kfa, D, ff_inner), ff_ba=_init_b(kba, ff_inner),
        ff_wg=_init_w(kfg, D, ff_inner), ff_bg=_init_b(kbg, ff_inner),
        ff_w2=_init_w(kf2, ff_inner, D), ff_b2=_init_b(kb2, D),
    )


def positional_encoding(max_len, d_model):
    pos = jnp.arange(max_len, dtype=F32)[:, None]
    two_i = jnp.arange(0, d_model, 2, dtype=F32)
    angle = pos / jnp.power(10000.0, two_i / d_model)
    enc = jnp.zeros((max_len, d_model), F32)
    enc = enc.at[:, 0::2].set(jnp.sin(angle))
    enc = enc.at[:, 1::2].set(jnp.cos(angle))
    return enc


def init_model_params(key, *, D, H, DH, latent, num_layer, max_len):
    keys = jax.random.split(key, 2 * num_layer + 2)
    blocks_pre = [_init_block(keys[i], D, H, DH) for i in range(num_layer)]
    blocks_post = [_init_block(keys[num_layer + i], D, H, DH) for i in range(num_layer)]
    kd1, kd2 = jax.random.split(keys[-2])
    ku1, ku2 = jax.random.split(keys[-1])
    return dict(
        pos_enc=positional_encoding(max_len, D),
        blocks_pre=blocks_pre,
        blocks_post=blocks_post,
        w_down=_init_w(kd1, D, latent), b_down=_init_b(kd2, latent),
        w_up=_init_w(ku1, latent, D), b_up=_init_b(ku2, D),
    )


# ----------------------------------------------------------------------------
# Main
# ----------------------------------------------------------------------------

if __name__ == "__main__":
    # Scaled-down shapes consistent with the module's forward
    # (original: seq=493, d_model=1024, heads=16, head_dim=64, 168+168 blocks, latent=128).
    B, S, D = 2, 16, 128
    H, DH = 4, 32            # H * DH == D (matches 16 * 64 == 1024 in the original)
    NUM_LAYER, LATENT = 2, 32
    MAX_LEN = 64             # analogue of max_len=493 (only first S rows are used)

    key = jax.random.PRNGKey(0)
    k_x, k_p = jax.random.split(key)
    x = jax.random.normal(k_x, (B, S * D), F32)   # flat input, view -> (B, S, D)

    params = init_model_params(
        k_p, D=D, H=H, DH=DH, latent=LATENT, num_layer=NUM_LAYER, max_len=MAX_LEN
    )

    fwd = jax.jit(functools.partial(basic_transformer_forward, S=S, D=D, H=H, DH=DH))
    out = fwd(params, x)
    jax.block_until_ready(out)
    assert out.shape == (B, S * D)
    print("KERNEL_OK")
</pallas_src>

<mosaic_0001>
module attributes {stable_mosaic.version = 11 : i64} {
  func.func @_ln_qkv_kernel(%arg0: i32, %arg1: memref<32x128xbf16, #tpu.memory_space<vmem>>, %arg2: memref<1x128xf32, #tpu.memory_space<vmem>>, %arg3: memref<1x128xf32, #tpu.memory_space<vmem>>, %arg4: memref<128x128xbf16, #tpu.memory_space<vmem>>, %arg5: memref<128x128xbf16, #tpu.memory_space<vmem>>, %arg6: memref<128x128xbf16, #tpu.memory_space<vmem>>, %arg7: memref<32x128xbf16, #tpu.memory_space<vmem>>, %arg8: memref<32x128xbf16, #tpu.memory_space<vmem>>, %arg9: memref<32x128xbf16, #tpu.memory_space<vmem>>) attributes {dimension_semantics = [#tpu.dimension_semantics<parallel>], iteration_bounds = array<i64: 1>, scalar_prefetch = 0 : i64, scratch_operands = 0 : i64, tpu.core_type = #tpu.core_type<tc>, window_params = [{transform_indices = @transform_0, window_bounds = array<i64: 32, 128>}, {pipeline_mode = #tpu.pipeline_mode<synchronous>, transform_indices = @transform_1, window_bounds = array<i64: 1, 128>}, {pipeline_mode = #tpu.pipeline_mode<synchronous>, transform_indices = @transform_2, window_bounds = array<i64: 1, 128>}, {pipeline_mode = #tpu.pipeline_mode<synchronous>, transform_indices = @transform_3, window_bounds = array<i64: 128, 128>}, {pipeline_mode = #tpu.pipeline_mode<synchronous>, transform_indices = @transform_4, window_bounds = array<i64: 128, 128>}, {pipeline_mode = #tpu.pipeline_mode<synchronous>, transform_indices = @transform_5, window_bounds = array<i64: 128, 128>}, {transform_indices = @transform_6, window_bounds = array<i64: 32, 128>}, {transform_indices = @transform_7, window_bounds = array<i64: 32, 128>}, {transform_indices = @transform_8, window_bounds = array<i64: 32, 128>}]} {
    %c0 = arith.constant 0 : index
    %c0_0 = arith.constant 0 : index
    %0 = vector.load %arg1[%c0, %c0_0] : memref<32x128xbf16, #tpu.memory_space<vmem>>, vector<32x128xbf16>
    %1 = arith.extf %0 : vector<32x128xbf16> to vector<32x128xf32>
    %c0_1 = arith.constant 0 : index
    %c0_2 = arith.constant 0 : index
    %2 = vector.load %arg2[%c0_1, %c0_2] : memref<1x128xf32, #tpu.memory_space<vmem>>, vector<1x128xf32>
    %c0_3 = arith.constant 0 : index
    %c0_4 = arith.constant 0 : index
    %3 = vector.load %arg3[%c0_3, %c0_4] : memref<1x128xf32, #tpu.memory_space<vmem>>, vector<1x128xf32>
    %cst = arith.constant dense<0.000000e+00> : vector<32xf32>
    %4 = vector.multi_reduction <add>, %1, %cst [1] : vector<32x128xf32> to vector<32xf32>
    %5 = vector.shape_cast %4 : vector<32xf32> to vector<32x1xf32>
    %cst_5 = arith.constant 1.280000e+02 : f32
    %6 = vector.broadcast %cst_5 : f32 to vector<32x1xf32>
    %7 = arith.divf %5, %6 : vector<32x1xf32>
    %8 = vector.broadcast %7 : vector<32x1xf32> to vector<32x128xf32>
    %9 = arith.subf %1, %8 : vector<32x128xf32>
    %10 = arith.mulf %9, %9 : vector<32x128xf32>
    %cst_6 = arith.constant dense<0.000000e+00> : vector<32xf32>
    %11 = vector.multi_reduction <add>, %10, %cst_6 [1] : vector<32x128xf32> to vector<32xf32>
    %12 = vector.shape_cast %11 : vector<32xf32> to vector<32x1xf32>
    %cst_7 = arith.constant 1.280000e+02 : f32
    %13 = vector.broadcast %cst_7 : f32 to vector<32x1xf32>
    %14 = arith.divf %12, %13 : vector<32x1xf32>
    %15 = vector.broadcast %7 : vector<32x1xf32> to vector<32x128xf32>
    %16 = arith.subf %1, %15 : vector<32x128xf32>
    %cst_8 = arith.constant 9.99999974E-6 : f32
    %17 = vector.broadcast %cst_8 : f32 to vector<32x1xf32>
    %18 = arith.addf %14, %17 : vector<32x1xf32>
    %19 = math.rsqrt %18 : vector<32x1xf32>
    %20 = vector.broadcast %19 : vector<32x1xf32> to vector<32x128xf32>
    %21 = arith.mulf %16, %20 : vector<32x128xf32>
    %22 = vector.broadcast %2 : vector<1x128xf32> to vector<32x128xf32>
    %23 = arith.mulf %21, %22 : vector<32x128xf32>
    %24 = vector.broadcast %3 : vector<1x128xf32> to vector<32x128xf32>
    %25 = arith.addf %23, %24 : vector<32x128xf32>
    %26 = arith.truncf %25 : vector<32x128xf32> to vector<32x128xbf16>
    %c0_9 = arith.constant 0 : index
    %c0_10 = arith.constant 0 : index
    %27 = vector.load %arg4[%c0_9, %c0_10] : memref<128x128xbf16, #tpu.memory_space<vmem>>, vector<128x128xbf16>
    %cst_11 = arith.constant dense<0.000000e+00> : vector<32x128xf32>
    %28 = tpu.matmul %26, %27, %cst_11 {dimension_numbers = #tpu.dot_dimension_numbers<[1], [0], [0], [1], [0, 0, 1, 1], [], []>} : vector<32x128xbf16>, vector<128x128xbf16>, vector<32x128xf32> -> vector<32x128xf32>
    %29 = arith.truncf %28 : vector<32x128xf32> to vector<32x128xbf16>
    %c0_12 = arith.constant 0 : index
    %c0_13 = arith.constant 0 : index
    %30 = vector.load %arg7[%c0_12, %c0_13] : memref<32x128xbf16, #tpu.memory_space<vmem>>, vector<32x128xbf16>
    tpu.vector_store %arg7[%c0_12, %c0_13], %29 {strides = array<i32>} : memref<32x128xbf16, #tpu.memory_space<vmem>>, vector<32x128xbf16>,
    %c0_14 = arith.constant 0 : index
    %c0_15 = arith.constant 0 : index
    %31 = vector.load %arg5[%c0_14, %c0_15] : memref<128x128xbf16, #tpu.memory_space<vmem>>, vector<128x128xbf16>
    %cst_16 = arith.constant dense<0.000000e+00> : vector<32x128xf32>
    %32 = tpu.matmul %26, %31, %cst_16 {dimension_numbers = #tpu.dot_dimension_numbers<[1], [0], [0], [1], [0, 0, 1, 1], [], []>} : vector<32x128xbf16>, vector<128x128xbf16>, vector<32x128xf32> -> vector<32x128xf32>
    %33 = arith.truncf %32 : vector<32x128xf32> to vector<32x128xbf16>
    %c0_17 = arith.constant 0 : index
    %c0_18 = arith.constant 0 : index
    %34 = vector.load %arg8[%c0_17, %c0_18] : memref<32x128xbf16, #tpu.memory_space<vmem>>, vector<32x128xbf16>
    tpu.vector_store %arg8[%c0_17, %c0_18], %33 {strides = array<i32>} : memref<32x128xbf16, #tpu.memory_space<vmem>>, vector<32x128xbf16>,
    %c0_19 = arith.constant 0 : index
    %c0_20 = arith.constant 0 : index
    %35 = vector.load %arg6[%c0_19, %c0_20] : memref<128x128xbf16, #tpu.memory_space<vmem>>, vector<128x128xbf16>
    %cst_21 = arith.constant dense<0.000000e+00> : vector<32x128xf32>
    %36 = tpu.matmul %26, %35, %cst_21 {dimension_numbers = #tpu.dot_dimension_numbers<[1], [0], [0], [1], [0, 0, 1, 1], [], []>} : vector<32x128xbf16>, vector<128x128xbf16>, vector<32x128xf32> -> vector<32x128xf32>
    %37 = arith.truncf %36 : vector<32x128xf32> to vector<32x128xbf16>
    %c0_22 = arith.constant 0 : index
    %c0_23 = arith.constant 0 : index
    %38 = vector.load %arg9[%c0_22, %c0_23] : memref<32x128xbf16, #tpu.memory_space<vmem>>, vector<32x128xbf16>
    tpu.vector_store %arg9[%c0_22, %c0_23], %37 {strides = array<i32>} : memref<32x128xbf16, #tpu.memory_space<vmem>>, vector<32x128xbf16>,
    return
  }
  func.func @transform_0(%arg0: i32) -> (i32, i32) {
    %c0_i32 = arith.constant 0 : i32
    %c0_i32_0 = arith.constant 0 : i32
    return %arg0, %c0_i32 : i32, i32
  }
  func.func @transform_1(%arg0: i32) -> (i32, i32) {
    %c0_i32 = arith.constant 0 : i32
    %c0_i32_0 = arith.constant 0 : i32
    %c0_i32_1 = arith.constant 0 : i32
    return %c0_i32, %c0_i32_0 : i32, i32
  }
  func.func @transform_2(%arg0: i32) -> (i32, i32) {
    %c0_i32 = arith.constant 0 : i32
    %c0_i32_0 = arith.constant 0 : i32
    %c0_i32_1 = arith.constant 0 : i32
    return %c0_i32, %c0_i32_0 : i32, i32
  }
  func.func @transform_3(%arg0: i32) -> (i32, i32) {
    %c0_i32 = arith.constant 0 : i32
    %c0_i32_0 = arith.constant 0 : i32
    %c0_i32_1 = arith.constant 0 : i32
    return %c0_i32, %c0_i32_0 : i32, i32
  }
  func.func @transform_4(%arg0: i32) -> (i32, i32) {
    %c0_i32 = arith.constant 0 : i32
    %c0_i32_0 = arith.constant 0 : i32
    %c0_i32_1 = arith.constant 0 : i32
    return %c0_i32, %c0_i32_0 : i32, i32
  }
  func.func @transform_5(%arg0: i32) -> (i32, i32) {
    %c0_i32 = arith.constant 0 : i32
    %c0_i32_0 = arith.constant 0 : i32
    %c0_i32_1 = arith.constant 0 : i32
    return %c0_i32, %c0_i32_0 : i32, i32
  }
  func.func @transform_6(%arg0: i32) -> (i32, i32) {
    %c0_i32 = arith.constant 0 : i32
    %c0_i32_0 = arith.constant 0 : i32
    return %arg0, %c0_i32 : i32, i32
  }
  func.func @transform_7(%arg0: i32) -> (i32, i32) {
    %c0_i32 = arith.constant 0 : i32
    %c0_i32_0 = arith.constant 0 : i32
    return %arg0, %c0_i32 : i32, i32
  }
  func.func @transform_8(%arg0: i32) -> (i32, i32) {
    %c0_i32 = arith.constant 0 : i32
    %c0_i32_0 = arith.constant 0 : i32
    return %arg0, %c0_i32 : i32, i32
  }
}

module attributes {stable_mosaic.version = 11 : i64} {
  func.func @_mm_bias_res_kernel(%arg0: i32, %arg1: i32, %arg2: memref<32x128xbf16, #tpu.memory_space<vmem>>, %arg3: memref<128x128xbf16, #tpu.memory_space<vmem>>, %arg4: memref<1x128xf32, #tpu.memory_space<vmem>>, %arg5: memref<32x128xbf16, #tpu.memory_space<vmem>>, %arg6: memref<32x128xbf16, #tpu.memory_space<vmem>>) attributes {dimension_semantics = [#tpu.dimension_semantics<parallel>, #tpu.dimension_semantics<parallel>], iteration_bounds = array<i64: 1, 1>, scalar_prefetch = 0 : i64, scratch_operands = 0 : i64, tpu.core_type = #tpu.core_type<tc>, window_params = [{transform_indices = @transform_0, window_bounds = array<i64: 32, 128>}, {transform_indices = @transform_1, window_bounds = array<i64: 128, 128>}, {transform_indices = @transform_2, window_bounds = array<i64: 1, 128>}, {transform_indices = @transform_3, window_bounds = array<i64: 32, 128>}, {transform_indices = @transform_4, window_bounds = array<i64: 32, 128>}]} {
    %c0 = arith.constant 0 : index
    %c0_0 = arith.constant 0 : index
    %0 = vector.load %arg2[%c0, %c0_0] : memref<32x128xbf16, #tpu.memory_space<vmem>>, vector<32x128xbf16>
    %c0_1 = arith.constant 0 : index
    %c0_2 = arith.constant 0 : index
    %1 = vector.load %arg3[%c0_1, %c0_2] : memref<128x128xbf16, #tpu.memory_space<vmem>>, vector<128x128xbf16>
    %cst = arith.constant dense<0.000000e+00> : vector<32x128xf32>
    %2 = tpu.matmul %0, %1, %cst {dimension_numbers = #tpu.dot_dimension_numbers<[1], [0], [0], [1], [0, 0, 1, 1], [], []>} : vector<32x128xbf16>, vector<128x128xbf16>, vector<32x128xf32> -> vector<32x128xf32>
    %c0_3 = arith.constant 0 : index
    %c0_4 = arith.constant 0 : index
    %3 = vector.load %arg4[%c0_3, %c0_4] : memref<1x128xf32, #tpu.memory_space<vmem>>, vector<1x128xf32>
    %4 = vector.broadcast %3 : vector<1x128xf32> to vector<32x128xf32>
    %5 = arith.addf %2, %4 : vector<32x128xf32>
    %c0_5 = arith.constant 0 : index
    %c0_6 = arith.constant 0 : index
    %6 = vector.load %arg5[%c0_5, %c0_6] : memref<32x128xbf16, #tpu.memory_space<vmem>>, vector<32x128xbf16>
    %7 = arith.extf %6 : vector<32x128xbf16> to vector<32x128xf32>
    %8 = arith.addf %5, %7 : vector<32x128xf32>
    %9 = arith.truncf %8 : vector<32x128xf32> to vector<32x128xbf16>
    %c0_7 = arith.constant 0 : index
    %c0_8 = arith.constant 0 : index
    %10 = vector.load %arg6[%c0_7, %c0_8] : memref<32x128xbf16, #tpu.memory_space<vmem>>, vector<32x128xbf16>
    tpu.vector_store %arg6[%c0_7, %c0_8], %9 {strides = array<i32>} : memref<32x128xbf16, #tpu.memory_space<vmem>>, vector<32x128xbf16>,
    return
  }
  func.func @transform_0(%arg0: i32, %arg1: i32) -> (i32, i32) {
    %c0_i32 = arith.constant 0 : i32
    %c0_i32_0 = arith.constant 0 : i32
    return %arg1, %c0_i32 : i32, i32
  }
  func.func @transform_1(%arg0: i32, %arg1: i32) -> (i32, i32) {
    %c0_i32 = arith.constant 0 : i32
    %c0_i32_0 = arith.constant 0 : i32
    return %c0_i32, %arg0 : i32, i32
  }
  func.func @transform_2(%arg0: i32, %arg1: i32) -> (i32, i32) {
    %c0_i32 = arith.constant 0 : i32
    %c0_i32_0 = arith.constant 0 : i32
    return %c0_i32, %arg0 : i32, i32
  }
  func.func @transform_3(%arg0: i32, %arg1: i32) -> (i32, i32) {
    %c0_i32 = arith.constant 0 : i32
    return %arg1, %arg0 : i32, i32
  }
  func.func @transform_4(%arg0: i32, %arg1: i32) -> (i32, i32) {
    %c0_i32 = arith.constant 0 : i32
    return %arg1, %arg0 : i32, i32
  }
}

module attributes {stable_mosaic.version = 11 : i64} {
  func.func @_attn_kernel(%arg0: i32, %arg1: memref<1x16x32xbf16, #tpu.memory_space<vmem>>, %arg2: memref<1x32x16xbf16, #tpu.memory_space<vmem>>, %arg3: memref<1x16x32xbf16, #tpu.memory_space<vmem>>, %arg4: memref<1x16x32xbf16, #tpu.memory_space<vmem>>) attributes {dimension_semantics = [#tpu.dimension_semantics<parallel>], iteration_bounds = array<i64: 8>, scalar_prefetch = 0 : i64, scratch_operands = 0 : i64, tpu.core_type = #tpu.core_type<tc>, window_params = [{transform_indices = @transform_0, window_bounds = array<i64: 1, 16, 32>}, {transform_indices = @transform_1, window_bounds = array<i64: 1, 32, 16>}, {transform_indices = @transform_2, window_bounds = array<i64: 1, 16, 32>}, {transform_indices = @transform_3, window_bounds = array<i64: 1, 16, 32>}]} {
    %c0 = arith.constant 0 : index
    %c0_0 = arith.constant 0 : index
    %c0_1 = arith.constant 0 : index
    %0 = vector.load %arg1[%c0, %c0_0, %c0_1] : memref<1x16x32xbf16, #tpu.memory_space<vmem>>, vector<1x16x32xbf16>
    %1 = vector.shape_cast %0 : vector<1x16x32xbf16> to vector<16x32xbf16>
    %2 = arith.extf %1 : vector<16x32xbf16> to vector<16x32xf32>
    %cst = arith.constant 0.176776692 : f32
    %3 = vector.broadcast %cst : f32 to vector<16x32xf32>
    %4 = arith.mulf %2, %3 : vector<16x32xf32>
    %5 = arith.truncf %4 : vector<16x32xf32> to vector<16x32xbf16>
    %c0_2 = arith.constant 0 : index
    %c0_3 = arith.constant 0 : index
    %c0_4 = arith.constant 0 : index
    %6 = vector.load %arg2[%c0_2, %c0_3, %c0_4] : memref<1x32x16xbf16, #tpu.memory_space<vmem>>, vector<1x32x16xbf16>
    %7 = vector.shape_cast %6 : vector<1x32x16xbf16> to vector<32x16xbf16>
    %cst_5 = arith.constant dense<0.000000e+00> : vector<16x16xf32>
    %8 = tpu.matmul %5, %7, %cst_5 {dimension_numbers = #tpu.dot_dimension_numbers<[1], [0], [0], [1], [0, 0, 1, 1], [], []>} : vector<16x32xbf16>, vector<32x16xbf16>, vector<16x16xf32> -> vector<16x16xf32>
    %cst_6 = arith.constant dense<0xFF800000> : vector<16xf32>
    %9 = vector.multi_reduction <maximumf>, %8, %cst_6 [1] : vector<16x16xf32> to vector<16xf32>
    %10 = vector.shape_cast %9 : vector<16xf32> to vector<16x1xf32>
    %11 = vector.broadcast %10 : vector<16x1xf32> to vector<16x16xf32>
    %12 = arith.subf %8, %11 : vector<16x16xf32>
    %13 = math.exp %12 : vector<16x16xf32>
    %cst_7 = arith.constant dense<0.000000e+00> : vector<16xf32>
    %14 = vector.multi_reduction <add>, %13, %cst_7 [1] : vector<16x16xf32> to vector<16xf32>
    %15 = vector.shape_cast %14 : vector<16xf32> to vector<16x1xf32>
    %16 = tpu.reciprocal %15 {approx = true} : vector<16x1xf32> -> vector<16x1xf32>
    %17 = vector.broadcast %16 : vector<16x1xf32> to vector<16x16xf32>
    %18 = arith.mulf %13, %17 : vector<16x16xf32>
    %19 = arith.truncf %18 : vector<16x16xf32> to vector<16x16xbf16>
    %c0_8 = arith.constant 0 : index
    %c0_9 = arith.constant 0 : index
    %c0_10 = arith.constant 0 : index
    %20 = vector.load %arg3[%c0_8, %c0_9, %c0_10] : memref<1x16x32xbf16, #tpu.memory_space<vmem>>, vector<1x16x32xbf16>
    %21 = vector.shape_cast %20 : vector<1x16x32xbf16> to vector<16x32xbf16>
    %cst_11 = arith.constant dense<0.000000e+00> : vector<16x32xf32>
    %22 = tpu.matmul %19, %21, %cst_11 {dimension_numbers = #tpu.dot_dimension_numbers<[1], [0], [0], [1], [0, 0, 1, 1], [], []>} : vector<16x16xbf16>, vector<16x32xbf16>, vector<16x32xf32> -> vector<16x32xf32>
    %23 = arith.truncf %22 : vector<16x32xf32> to vector<16x32xbf16>
    %c0_12 = arith.constant 0 : index
    %c0_13 = arith.constant 0 : index
    %c0_14 = arith.constant 0 : index
    %24 = vector.load %arg4[%c0_12, %c0_13, %c0_14] : memref<1x16x32xbf16, #tpu.memory_space<vmem>>, vector<1x16x32xbf16>
    %25 = vector.shape_cast %24 : vector<1x16x32xbf16> to vector<16x32xbf16>
    %26 = vector.shape_cast %23 : vector<16x32xbf16> to vector<1x16x32xbf16>
    tpu.vector_store %arg4[%c0_12, %c0_13, %c0_14], %26 {strides = array<i32>} : memref<1x16x32xbf16, #tpu.memory_space<vmem>>, vector<1x16x32xbf16>,
    return
  }
  func.func @transform_0(%arg0: i32) -> (i32, i32, i32) {
    %c0_i32 = arith.constant 0 : i32
    %c0_i32_0 = arith.constant 0 : i32
    %c0_i32_1 = arith.constant 0 : i32
    return %arg0, %c0_i32, %c0_i32_0 : i32, i32, i32
  }
  func.func @transform_1(%arg0: i32) -> (i32, i32, i32) {
    %c0_i32 = arith.constant 0 : i32
    %c0_i32_0 = arith.constant 0 : i32
    %c0_i32_1 = arith.constant 0 : i32
    return %arg0, %c0_i32, %c0_i32_0 : i32, i32, i32
  }
  func.func @transform_2(%arg0: i32) -> (i32, i32, i32) {
    %c0_i32 = arith.constant 0 : i32
    %c0_i32_0 = arith.constant 0 : i32
    %c0_i32_1 = arith.constant 0 : i32
    return %arg0, %c0_i32, %c0_i32_0 : i32, i32, i32
  }
  func.func @transform_3(%arg0: i32) -> (i32, i32, i32) {
    %c0_i32 = arith.constant 0 : i32
    %c0_i32_0 = arith.constant 0 : i32
    %c0_i32_1 = arith.constant 0 : i32
    return %arg0, %c0_i32, %c0_i32_0 : i32, i32, i32
  }
}

module attributes {stable_mosaic.version = 11 : i64} {
  func.func @_ln_ff_geglu_kernel(%arg0: i32, %arg1: i32, %arg2: memref<32x128xbf16, #tpu.memory_space<vmem>>, %arg3: memref<1x128xf32, #tpu.memory_space<vmem>>, %arg4: memref<1x128xf32, #tpu.memory_space<vmem>>, %arg5: memref<128x512xbf16, #tpu.memory_space<vmem>>, %arg6: memref<1x512xf32, #tpu.memory_space<vmem>>, %arg7: memref<128x512xbf16, #tpu.memory_space<vmem>>, %arg8: memref<1x512xf32, #tpu.memory_space<vmem>>, %arg9: memref<32x512xbf16, #tpu.memory_space<vmem>>) attributes {dimension_semantics = [#tpu.dimension_semantics<parallel>, #tpu.dimension_semantics<parallel>], iteration_bounds = array<i64: 1, 1>, scalar_prefetch = 0 : i64, scratch_operands = 0 : i64, tpu.core_type = #tpu.core_type<tc>, window_params = [{transform_indices = @transform_0, window_bounds = array<i64: 32, 128>}, {pipeline_mode = #tpu.pipeline_mode<synchronous>, transform_indices = @transform_1, window_bounds = array<i64: 1, 128>}, {pipeline_mode = #tpu.pipeline_mode<synchronous>, transform_indices = @transform_2, window_bounds = array<i64: 1, 128>}, {transform_indices = @transform_3, window_bounds = array<i64: 128, 512>}, {transform_indices = @transform_4, window_bounds = array<i64: 1, 512>}, {transform_indices = @transform_5, window_bounds = array<i64: 128, 512>}, {transform_indices = @transform_6, window_bounds = array<i64: 1, 512>}, {transform_indices = @transform_7, window_bounds = array<i64: 32, 512>}]} {
    %c0 = arith.constant 0 : index
    %c0_0 = arith.constant 0 : index
    %0 = vector.load %arg2[%c0, %c0_0] : memref<32x128xbf16, #tpu.memory_space<vmem>>, vector<32x128xbf16>
    %1 = arith.extf %0 : vector<32x128xbf16> to vector<32x128xf32>
    %c0_1 = arith.constant 0 : index
    %c0_2 = arith.constant 0 : index
    %2 = vector.load %arg3[%c0_1, %c0_2] : memref<1x128xf32, #tpu.memory_space<vmem>>, vector<1x128xf32>
    %c0_3 = arith.constant 0 : index
    %c0_4 = arith.constant 0 : index
    %3 = vector.load %arg4[%c0_3, %c0_4] : memref<1x128xf32, #tpu.memory_space<vmem>>, vector<1x128xf32>
    %cst = arith.constant dense<0.000000e+00> : vector<32xf32>
    %4 = vector.multi_reduction <add>, %1, %cst [1] : vector<32x128xf32> to vector<32xf32>
    %5 = vector.shape_cast %4 : vector<32xf32> to vector<32x1xf32>
    %cst_5 = arith.constant 1.280000e+02 : f32
    %6 = vector.broadcast %cst_5 : f32 to vector<32x1xf32>
    %7 = arith.divf %5, %6 : vector<32x1xf32>
    %8 = vector.broadcast %7 : vector<32x1xf32> to vector<32x128xf32>
    %9 = arith.subf %1, %8 : vector<32x128xf32>
    %10 = arith.mulf %9, %9 : vector<32x128xf32>
    %cst_6 = arith.constant dense<0.000000e+00> : vector<32xf32>
    %11 = vector.multi_reduction <add>, %10, %cst_6 [1] : vector<32x128xf32> to vector<32xf32>
    %12 = vector.shape_cast %11 : vector<32xf32> to vector<32x1xf32>
    %cst_7 = arith.constant 1.280000e+02 : f32
    %13 = vector.broadcast %cst_7 : f32 to vector<32x1xf32>
    %14 = arith.divf %12, %13 : vector<32x1xf32>
    %15 = vector.broadcast %7 : vector<32x1xf32> to vector<32x128xf32>
    %16 = arith.subf %1, %15 : vector<32x128xf32>
    %cst_8 = arith.constant 9.99999974E-6 : f32
    %17 = vector.broadcast %cst_8 : f32 to vector<32x1xf32>
    %18 = arith.addf %14, %17 : vector<32x1xf32>
    %19 = math.rsqrt %18 : vector<32x1xf32>
    %20 = vector.broadcast %19 : vector<32x1xf32> to vector<32x128xf32>
    %21 = arith.mulf %16, %20 : vector<32x128xf32>
    %22 = vector.broadcast %2 : vector<1x128xf32> to vector<32x128xf32>
    %23 = arith.mulf %21, %22 : vector<32x128xf32>
    %24 = vector.broadcast %3 : vector<1x128xf32> to vector<32x128xf32>
    %25 = arith.addf %23, %24 : vector<32x128xf32>
    %26 = arith.truncf %25 : vector<32x128xf32> to vector<32x128xbf16>
    %c0_9 = arith.constant 0 : index
    %c0_10 = arith.constant 0 : index
    %27 = vector.load %arg5[%c0_9, %c0_10] : memref<128x512xbf16, #tpu.memory_space<vmem>>, vector<128x512xbf16>
    %cst_11 = arith.constant dense<0.000000e+00> : vector<32x512xf32>
    %28 = tpu.matmul %26, %27, %cst_11 {dimension_numbers = #tpu.dot_dimension_numbers<[1], [0], [0], [1], [0, 0, 1, 1], [], []>} : vector<32x128xbf16>, vector<128x512xbf16>, vector<32x512xf32> -> vector<32x512xf32>
    %c0_12 = arith.constant 0 : index
    %c0_13 = arith.constant 0 : index
    %29 = vector.load %arg6[%c0_12, %c0_13] : memref<1x512xf32, #tpu.memory_space<vmem>>, vector<1x512xf32>
    %30 = vector.broadcast %29 : vector<1x512xf32> to vector<32x512xf32>
    %31 = arith.addf %28, %30 : vector<32x512xf32>
    %c0_14 = arith.constant 0 : index
    %c0_15 = arith.constant 0 : index
    %32 = vector.load %arg7[%c0_14, %c0_15] : memref<128x512xbf16, #tpu.memory_space<vmem>>, vector<128x512xbf16>
    %cst_16 = arith.constant dense<0.000000e+00> : vector<32x512xf32>
    %33 = tpu.matmul %26, %32, %cst_16 {dimension_numbers = #tpu.dot_dimension_numbers<[1], [0], [0], [1], [0, 0, 1, 1], [], []>} : vector<32x128xbf16>, vector<128x512xbf16>, vector<32x512xf32> -> vector<32x512xf32>
    %c0_17 = arith.constant 0 : index
    %c0_18 = arith.constant 0 : index
    %34 = vector.load %arg8[%c0_17, %c0_18] : memref<1x512xf32, #tpu.memory_space<vmem>>, vector<1x512xf32>
    %35 = vector.broadcast %34 : vector<1x512xf32> to vector<32x512xf32>
    %36 = arith.addf %33, %35 : vector<32x512xf32>
    %37 = arith.mulf %36, %36 : vector<32x512xf32>
    %38 = arith.mulf %36, %37 : vector<32x512xf32>
    %cst_19 = arith.constant 4.471500e-02 : f32
    %39 = vector.broadcast %cst_19 : f32 to vector<32x512xf32>
    %40 = arith.mulf %39, %38 : vector<32x512xf32>
    %41 = arith.addf %36, %40 : vector<32x512xf32>
    %cst_20 = arith.constant 0.797884583 : f32
    %42 = vector.broadcast %cst_20 : f32 to vector<32x512xf32>
    %43 = arith.mulf %42, %41 : vector<32x512xf32>
    %44 = math.tanh %43 : vector<32x512xf32>
    %cst_21 = arith.constant 1.000000e+00 : f32
    %45 = vector.broadcast %cst_21 : f32 to vector<32x512xf32>
    %46 = arith.addf %45, %44 : vector<32x512xf32>
    %cst_22 = arith.constant 5.000000e-01 : f32
    %47 = vector.broadcast %cst_22 : f32 to vector<32x512xf32>
    %48 = arith.mulf %47, %46 : vector<32x512xf32>
    %49 = arith.mulf %36, %48 : vector<32x512xf32>
    %50 = arith.mulf %31, %49 : vector<32x512xf32>
    %51 = arith.truncf %50 : vector<32x512xf32> to vector<32x512xbf16>
    %c0_23 = arith.constant 0 : index
    %c0_24 = arith.constant 0 : index
    %52 = vector.load %arg9[%c0_23, %c0_24] : memref<32x512xbf16, #tpu.memory_space<vmem>>, vector<32x512xbf16>
    tpu.vector_store %arg9[%c0_23, %c0_24], %51 {strides = array<i32>} : memref<32x512xbf16, #tpu.memory_space<vmem>>, vector<32x512xbf16>,
    return
  }
  func.func @transform_0(%arg0: i32, %arg1: i32) -> (i32, i32) {
    %c0_i32 = arith.constant 0 : i32
    %c0_i32_0 = arith.constant 0 : i32
    return %arg1, %c0_i32 : i32, i32
  }
  func.func @transform_1(%arg0: i32, %arg1: i32) -> (i32, i32) {
    %c0_i32 = arith.constant 0 : i32
    %c0_i32_0 = arith.constant 0 : i32
    %c0_i32_1 = arith.constant 0 : i32
    return %c0_i32, %c0_i32_0 : i32, i32
  }
  func.func @transform_2(%arg0: i32, %arg1: i32) -> (i32, i32) {
    %c0_i32 = arith.constant 0 : i32
    %c0_i32_0 = arith.constant 0 : i32
    %c0_i32_1 = arith.constant 0 : i32
    return %c0_i32, %c0_i32_0 : i32, i32
  }
  func.func @transform_3(%arg0: i32, %arg1: i32) -> (i32, i32) {
    %c0_i32 = arith.constant 0 : i32
    %c0_i32_0 = arith.constant 0 : i32
    return %c0_i32, %arg0 : i32, i32
  }
  func.func @transform_4(%arg0: i32, %arg1: i32) -> (i32, i32) {
    %c0_i32 = arith.constant 0 : i32
    %c0_i32_0 = arith.constant 0 : i32
    return %c0_i32, %arg0 : i32, i32
  }
  func.func @transform_5(%arg0: i32, %arg1: i32) -> (i32, i32) {
    %c0_i32 = arith.constant 0 : i32
    %c0_i32_0 = arith.constant 0 : i32
    return %c0_i32, %arg0 : i32, i32
  }
  func.func @transform_6(%arg0: i32, %arg1: i32) -> (i32, i32) {
    %c0_i32 = arith.constant 0 : i32
    %c0_i32_0 = arith.constant 0 : i32
    return %c0_i32, %arg0 : i32, i32
  }
  func.func @transform_7(%arg0: i32, %arg1: i32) -> (i32, i32) {
    %c0_i32 = arith.constant 0 : i32
    return %arg1, %arg0 : i32, i32
  }
}

module attributes {stable_mosaic.version = 11 : i64} {
  func.func @_mm_bias_res_kernel(%arg0: i32, %arg1: i32, %arg2: memref<32x512xbf16, #tpu.memory_space<vmem>>, %arg3: memref<512x128xbf16, #tpu.memory_space<vmem>>, %arg4: memref<1x128xf32, #tpu.memory_space<vmem>>, %arg5: memref<32x128xbf16, #tpu.memory_space<vmem>>, %arg6: memref<32x128xbf16, #tpu.memory_space<vmem>>) attributes {dimension_semantics = [#tpu.dimension_semantics<parallel>, #tpu.dimension_semantics<parallel>], iteration_bounds = array<i64: 1, 1>, scalar_prefetch = 0 : i64, scratch_operands = 0 : i64, tpu.core_type = #tpu.core_type<tc>, window_params = [{transform_indices = @transform_0, window_bounds = array<i64: 32, 512>}, {transform_indices = @transform_1, window_bounds = array<i64: 512, 128>}, {transform_indices = @transform_2, window_bounds = array<i64: 1, 128>}, {transform_indices = @transform_3, window_bounds = array<i64: 32, 128>}, {transform_indices = @transform_4, window_bounds = array<i64: 32, 128>}]} {
    %c0 = arith.constant 0 : index
    %c0_0 = arith.constant 0 : index
    %0 = vector.load %arg2[%c0, %c0_0] : memref<32x512xbf16, #tpu.memory_space<vmem>>, vector<32x512xbf16>
    %c0_1 = arith.constant 0 : index
    %c0_2 = arith.constant 0 : index
    %1 = vector.load %arg3[%c0_1, %c0_2] : memref<512x128xbf16, #tpu.memory_space<vmem>>, vector<512x128xbf16>
    %cst = arith.constant dense<0.000000e+00> : vector<32x128xf32>
    %2 = tpu.matmul %0, %1, %cst {dimension_numbers = #tpu.dot_dimension_numbers<[1], [0], [0], [1], [0, 0, 1, 1], [], []>} : vector<32x512xbf16>, vector<512x128xbf16>, vector<32x128xf32> -> vector<32x128xf32>
    %c0_3 = arith.constant 0 : index
    %c0_4 = arith.constant 0 : index
    %3 = vector.load %arg4[%c0_3, %c0_4] : memref<1x128xf32, #tpu.memory_space<vmem>>, vector<1x128xf32>
    %4 = vector.broadcast %3 : vector<1x128xf32> to vector<32x128xf32>
    %5 = arith.addf %2, %4 : vector<32x128xf32>
    %c0_5 = arith.constant 0 : index
    %c0_6 = arith.constant 0 : index
    %6 = vector.load %arg5[%c0_5, %c0_6] : memref<32x128xbf16, #tpu.memory_space<vmem>>, vector<32x128xbf16>
    %7 = arith.extf %6 : vector<32x128xbf16> to vector<32x128xf32>
    %8 = arith.addf %5, %7 : vector<32x128xf32>
    %9 = arith.truncf %8 : vector<32x128xf32> to vector<32x128xbf16>
    %c0_7 = arith.constant 0 : index
    %c0_8 = arith.constant 0 : index
    %10 = vector.load %arg6[%c0_7, %c0_8] : memref<32x128xbf16, #tpu.memory_space<vmem>>, vector<32x128xbf16>
    tpu.vector_store %arg6[%c0_7, %c0_8], %9 {strides = array<i32>} : memref<32x128xbf16, #tpu.memory_space<vmem>>, vector<32x128xbf16>,
    return
  }
  func.func @transform_0(%arg0: i32, %arg1: i32) -> (i32, i32) {
    %c0_i32 = arith.constant 0 : i32
    %c0_i32_0 = arith.constant 0 : i32
    return %arg1, %c0_i32 : i32, i32
  }
  func.func @transform_1(%arg0: i32, %arg1: i32) -> (i32, i32) {
    %c0_i32 = arith.constant 0 : i32
    %c0_i32_0 = arith.constant 0 : i32
    return %c0_i32, %arg0 : i32, i32
  }
  func.func @transform_2(%arg0: i32, %arg1: i32) -> (i32, i32) {
    %c0_i32 = arith.constant 0 : i32
    %c0_i32_0 = arith.constant 0 : i32
    return %c0_i32, %arg0 : i32, i32
  }
  func.func @transform_3(%arg0: i32, %arg1: i32) -> (i32, i32) {
    %c0_i32 = arith.constant 0 : i32
    return %arg1, %arg0 : i32, i32
  }
  func.func @transform_4(%arg0: i32, %arg1: i32) -> (i32, i32) {
    %c0_i32 = arith.constant 0 : i32
    return %arg1, %arg0 : i32, i32
  }
}

module attributes {stable_mosaic.version = 11 : i64} {
  func.func @_mm_bias_kernel(%arg0: i32, %arg1: i32, %arg2: memref<32x128xbf16, #tpu.memory_space<vmem>>, %arg3: memref<128x32xbf16, #tpu.memory_space<vmem>>, %arg4: memref<1x32xf32, #tpu.memory_space<vmem>>, %arg5: memref<32x32xbf16, #tpu.memory_space<vmem>>) attributes {dimension_semantics = [#tpu.dimension_semantics<parallel>, #tpu.dimension_semantics<parallel>], iteration_bounds = array<i64: 1, 1>, scalar_prefetch = 0 : i64, scratch_operands = 0 : i64, tpu.core_type = #tpu.core_type<tc>, window_params = [{transform_indices = @transform_0, window_bounds = array<i64: 32, 128>}, {transform_indices = @transform_1, window_bounds = array<i64: 128, 32>}, {transform_indices = @transform_2, window_bounds = array<i64: 1, 32>}, {transform_indices = @transform_3, window_bounds = array<i64: 32, 32>}]} {
    %c0 = arith.constant 0 : index
    %c0_0 = arith.constant 0 : index
    %0 = vector.load %arg2[%c0, %c0_0] : memref<32x128xbf16, #tpu.memory_space<vmem>>, vector<32x128xbf16>
    %c0_1 = arith.constant 0 : index
    %c0_2 = arith.constant 0 : index
    %1 = vector.load %arg3[%c0_1, %c0_2] : memref<128x32xbf16, #tpu.memory_space<vmem>>, vector<128x32xbf16>
    %cst = arith.constant dense<0.000000e+00> : vector<32x32xf32>
    %2 = tpu.matmul %0, %1, %cst {dimension_numbers = #tpu.dot_dimension_numbers<[1], [0], [0], [1], [0, 0, 1, 1], [], []>} : vector<32x128xbf16>, vector<128x32xbf16>, vector<32x32xf32> -> vector<32x32xf32>
    %c0_3 = arith.constant 0 : index
    %c0_4 = arith.constant 0 : index
    %3 = vector.load %arg4[%c0_3, %c0_4] : memref<1x32xf32, #tpu.memory_space<vmem>>, vector<1x32xf32>
    %4 = vector.broadcast %3 : vector<1x32xf32> to vector<32x32xf32>
    %5 = arith.addf %2, %4 : vector<32x32xf32>
    %6 = arith.truncf %5 : vector<32x32xf32> to vector<32x32xbf16>
    %c0_5 = arith.constant 0 : index
    %c0_6 = arith.constant 0 : index
    %7 = vector.load %arg5[%c0_5, %c0_6] : memref<32x32xbf16, #tpu.memory_space<vmem>>, vector<32x32xbf16>
    tpu.vector_store %arg5[%c0_5, %c0_6], %6 {strides = array<i32>} : memref<32x32xbf16, #tpu.memory_space<vmem>>, vector<32x32xbf16>,
    return
  }
  func.func @transform_0(%arg0: i32, %arg1: i32) -> (i32, i32) {
    %c0_i32 = arith.constant 0 : i32
    %c0_i32_0 = arith.constant 0 : i32
    return %arg1, %c0_i32 : i32, i32
  }
  func.func @transform_1(%arg0: i32, %arg1: i32) -> (i32, i32) {
    %c0_i32 = arith.constant 0 : i32
    %c0_i32_0 = arith.constant 0 : i32
    return %c0_i32, %arg0 : i32, i32
  }
  func.func @transform_2(%arg0: i32, %arg1: i32) -> (i32, i32) {
    %c0_i32 = arith.constant 0 : i32
    %c0_i32_0 = arith.constant 0 : i32
    return %c0_i32, %arg0 : i32, i32
  }
  func.func @transform_3(%arg0: i32, %arg1: i32) -> (i32, i32) {
    %c0_i32 = arith.constant 0 : i32
    return %arg1, %arg0 : i32, i32
  }
}

module attributes {stable_mosaic.version = 11 : i64} {
  func.func @_mm_bias_kernel(%arg0: i32, %arg1: i32, %arg2: memref<32x32xbf16, #tpu.memory_space<vmem>>, %arg3: memref<32x128xbf16, #tpu.memory_space<vmem>>, %arg4: memref<1x128xf32, #tpu.memory_space<vmem>>, %arg5: memref<32x128xbf16, #tpu.memory_space<vmem>>) attributes {dimension_semantics = [#tpu.dimension_semantics<parallel>, #tpu.dimension_semantics<parallel>], iteration_bounds = array<i64: 1, 1>, scalar_prefetch = 0 : i64, scratch_operands = 0 : i64, tpu.core_type = #tpu.core_type<tc>, window_params = [{transform_indices = @transform_0, window_bounds = array<i64: 32, 32>}, {transform_indices = @transform_1, window_bounds = array<i64: 32, 128>}, {transform_indices = @transform_2, window_bounds = array<i64: 1, 128>}, {transform_indices = @transform_3, window_bounds = array<i64: 32, 128>}]} {
    %c0 = arith.constant 0 : index
    %c0_0 = arith.constant 0 : index
    %0 = vector.load %arg2[%c0, %c0_0] : memref<32x32xbf16, #tpu.memory_space<vmem>>, vector<32x32xbf16>
    %c0_1 = arith.constant 0 : index
    %c0_2 = arith.constant 0 : index
    %1 = vector.load %arg3[%c0_1, %c0_2] : memref<32x128xbf16, #tpu.memory_space<vmem>>, vector<32x128xbf16>
    %cst = arith.constant dense<0.000000e+00> : vector<32x128xf32>
    %2 = tpu.matmul %0, %1, %cst {dimension_numbers = #tpu.dot_dimension_numbers<[1], [0], [0], [1], [0, 0, 1, 1], [], []>} : vector<32x32xbf16>, vector<32x128xbf16>, vector<32x128xf32> -> vector<32x128xf32>
    %c0_3 = arith.constant 0 : index
    %c0_4 = arith.constant 0 : index
    %3 = vector.load %arg4[%c0_3, %c0_4] : memref<1x128xf32, #tpu.memory_space<vmem>>, vector<1x128xf32>
    %4 = vector.broadcast %3 : vector<1x128xf32> to vector<32x128xf32>
    %5 = arith.addf %2, %4 : vector<32x128xf32>
    %6 = arith.truncf %5 : vector<32x128xf32> to vector<32x128xbf16>
    %c0_5 = arith.constant 0 : index
    %c0_6 = arith.constant 0 : index
    %7 = vector.load %arg5[%c0_5, %c0_6] : memref<32x128xbf16, #tpu.memory_space<vmem>>, vector<32x128xbf16>
    tpu.vector_store %arg5[%c0_5, %c0_6], %6 {strides = array<i32>} : memref<32x128xbf16, #tpu.memory_space<vmem>>, vector<32x128xbf16>,
    return
  }
  func.func @transform_0(%arg0: i32, %arg1: i32) -> (i32, i32) {
    %c0_i32 = arith.constant 0 : i32
    %c0_i32_0 = arith.constant 0 : i32
    return %arg1, %c0_i32 : i32, i32
  }
  func.func @transform_1(%arg0: i32, %arg1: i32) -> (i32, i32) {
    %c0_i32 = arith.constant 0 : i32
    %c0_i32_0 = arith.constant 0 : i32
    return %c0_i32, %arg0 : i32, i32
  }
  func.func @transform_2(%arg0: i32, %arg1: i32) -> (i32, i32) {
    %c0_i32 = arith.constant 0 : i32
    %c0_i32_0 = arith.constant 0 : i32
    return %c0_i32, %arg0 : i32, i32
  }
  func.func @transform_3(%arg0: i32, %arg1: i32) -> (i32, i32) {
    %c0_i32 = arith.constant 0 : i32
    return %arg1, %arg0 : i32, i32
  }
}

</mosaic_0001>

<bundles_post_ra>
// kernel: basic_transformer_forward.36
= control target key start
LH: loop header
LB: loop body
LE: loop exit
PB: predicated region body
PF: predicated region fallthrough
CT: control target
= control target key end

     0   :  { %s293_s1 = inlined_call_operand.vmem [shape: bf16[128,128], index: 1, kind: input, shape index: {}]   ;;  %s294_s2 = inlined_call_operand.vmem [shape: f32[1,128], index: 2, kind: input, shape index: {}]   ;;  %s295_s0 = inlined_call_operand.vmem [shape: bf16[32,128], index: 0, kind: input, shape index: {}]   ;;  %s296_s3 = inlined_call_operand.vmem [shape: bf16[32,128], index: 3, kind: input, shape index: {}]   ;;  %s297_s4 = inlined_call_operand.vmem [shape: bf16[32,128], index: 4, kind: output, shape index: {}]  }
   0x1   :  { %v193_v0 = vld [vmem:[%s293_s1 + $0x38] sm:$0xff]  ;;  %v192_v1 = vld [vmem:[%s293_s1 + $0x30] sm:$0xff]  ;;  %v191_v2 = vld [vmem:[%s293_s1 + $0x28] sm:$0xff] }
   0x2   :  { %101 = vmatpush.bf16.msra.mxu0 %v193_v0  ;;  %214 = vmatpush.bf16.msra.mxu1 %v193_v0  ;;  %v190_v3 = vld [vmem:[%s293_s1 + $0x20] sm:$0xff]  ;;  %v189_v4 = vld [vmem:[%s293_s1 + $0x18] sm:$0xff]  ;;  %v188_v5 = vld [vmem:[%s293_s1 + $0x10] sm:$0xff] }
   0x3   :  { %v187_v6 = vld [vmem:[%s293_s1 + $0x8] sm:$0xff]  ;;  %v186_v7 = vld [vmem:[%s293_s1] sm:$0xff] }
   0x4   :  { %v184_v8 = vld [vmem:[%s295_s0] sm:$0xff]  ;;  %v185_v9 = vld [vmem:[%s295_s0 + $0x8] sm:$0xff] }
   0x5   :  { %v222_v12 = vld [vmem:[%s294_s2] ss:$0 sm:$0xff]  ;;  %v212_v14 = vld [vmem:[%s296_s3 + $0x8] sm:$0xff]  }
   0x6   :  { %102 = vmatpush.bf16.msra.mxu0 %v192_v1  ;;  %215 = vmatpush.bf16.msra.mxu1 %v192_v1  ;;  %v195_v13 = vld [vmem:[%s296_s3] sm:$0xff]   ;;  %v200_v16 = vunpack.c.l.bf16 %v212_v14  ;;  %v201_v20 = vunpack.c.h.bf16 %v212_v14 }
   0x7   :  { %v196_v15 = vunpack.c.l.bf16 %v195_v13  ;;  %v197_v19 = vunpack.c.h.bf16 %v195_v13 }
   0xa   :  { %103 = vmatpush.bf16.msra.mxu0 %v191_v2  ;;  %216 = vmatpush.bf16.msra.mxu1 %v191_v2 }
   0xe   :  { %104 = vmatpush.bf16.msra.mxu0 %v190_v3  ;;  %217 = vmatpush.bf16.msra.mxu1 %v190_v3 }
  0x12   :  { %105 = vmatpush.bf16.msra.mxu0 %v189_v4  ;;  %218 = vmatpush.bf16.msra.mxu1 %v189_v4 }
  0x16   :  { %106 = vmatpush.bf16.msra.mxu0 %v188_v5  ;;  %219 = vmatpush.bf16.msra.mxu1 %v188_v5 }
  0x1a   :  { %107 = vmatpush.bf16.msra.mxu0 %v187_v6  ;;  %220 = vmatpush.bf16.msra.mxu1 %v187_v6 }
  0x1e   :  { %108 = vmatpush.bf16.msra.mxu0 %v186_v7  ;;  %221 = vmatpush.bf16.msra.mxu1 %v186_v7 }
  0x21   :  { %109 = vmatmul.bf16.vlgmr.msra.gmra.mxu0 %v184_v8  ;;  %114 = vmatmul.bf16.vlgmr.msra.gmra.mxu1 %v185_v9 }
  0x9e   :  { %v110_v10 = vpop.f32.mrf.mxu0  ;;  %v115_v11 = vpop.f32.mrf.mxu1 }
  0x9f   :  { %v111_v17 = vadd.f32 %v222_v12, %v110_v10  ;;  %v116_v18 = vadd.f32 %v222_v12, %v115_v11 }
  0xa1   :  { %v128_v25 = vadd.f32 %v196_v15, %v111_v17  ;;  %v130_v26 = vadd.f32 %v200_v16, %v116_v18 }
  0xa6   :  { %v112_v21 = vpop.f32.mrf.mxu0  ;;  %v117_v22 = vpop.f32.mrf.mxu1 }
  0xa7   :  { %v113_v23 = vadd.f32 %v222_v12, %v112_v21  ;;  %v118_v24 = vadd.f32 %v222_v12, %v117_v22 }
  0xa9   :  { %v129_v27 = vadd.f32 %v197_v19, %v113_v23  ;;  %v131_v28 = vadd.f32 %v201_v20, %v118_v24 }
  0xab   :  { %v205_v29 = vpack.c.bf16 %v129_v27, %v128_v25  ;;  %v210_v30 = vpack.c.bf16 %v131_v28, %v130_v26 }
  0xad   :  { %206 = vst [vmem:[%s297_s4] sm:$0xff] %v205_v29  }
  0xae   :  { %213 = vst [vmem:[%s297_s4 + $0x8] sm:$0xff] %v210_v30  }

// kernel: basic_transformer_forward.35
= control target key start
LH: loop header
LB: loop body
LE: loop exit
PB: predicated region body
PF: predicated region fallthrough
CT: control target
= control target key end

     0   :  { %s470_s12 = smov 0   ;;  %s503_s0 = inlined_call_operand.vmem [shape: bf16[8,16,32], index: 0, kind: input, shape index: {}]   ;;  %s504_s1 = inlined_call_operand.vmem [shape: bf16[8,32,16], index: 1, kind: input, shape index: {}]   ;;  %s505_s2 = inlined_call_operand.vmem [shape: bf16[8,16,32], index: 2, kind: input, shape index: {}]   ;;  %s506_s3 = inlined_call_operand.vmem [shape: bf16[8,16,32], index: 3, kind: output, shape index: {}]  }
   0x1 LB: > { %s386_s13 = sadd.s32 4294967295, %s448_s12   ;;  %p390_p0 = scmp.ge.s32.totalorder %s448_s12, 1  ;;  %s448_s12 = sphi %s470_s12, %s13_s12  }
   0x2   : > { %p157_p1 = scmp.lt.s32.totalorder %s448_s12, 9 }
   0x4   : > { %p158_p2 = pnand %p390_p0, %p157_p1 }
   0x5   : > { %p191_p3 = scmp.lt.s32.totalorder (!%p158_p2), %s386_s13, 7 }
   0x6   : > { %161 = sbr.rel (%p158_p2) target bundleno = 549 (0x225), region = 32 }
   0xb   : > { %s508_s13 = smov (!%p191_p3, %s386_s13), 7  ;;  %vm235_vm0 = vcmask 261120   ;;  %vm253_vm1 = vcmask 130048   ;;  %vm304_vm2 = vcmask 257024  }
   0xc   : > { %s478_s14 = sshll.u32 %s508_s13, 3  ;;  %s416_s15 = sshll.u32 %s508_s13, 4 }
   0xd   : > { %s200_s18 = scalar_lea.vmem %s504_s1, %s416_s15  ;;  %s195_s21 = scalar_lea.vmem %s503_s0, %s478_s14 }
   0xe   : > { %v420_v0 = vld [vmem:[%s200_s18 + $0x8] sm:$0xff]  ;;  %v423_v1 = vld [vmem:[%s195_s21] sm:$0xff]   ;;  %s205_s24 = scalar_lea.vmem %s505_s2, %s478_s14  ;;  %s210_s27 = scalar_lea.vmem %s506_s3, %s478_s14 }
   0xf   : > { %v424_v2 = vunpack.c.l.bf16 %v423_v1  ;;  %v425_v3 = vunpack.c.h.bf16 %v423_v1  ;;  %245 = vmatpush.bf16.msra.mxu0 %v420_v0  ;;  %v419_v4 = vld [vmem:[%s200_s18] sm:$0xff] }
  0x10   : > { %v421_v22 = vld [vmem:[%s205_s24] sm:$0xff] }
  0x11   : > { %v216_v5 = vmul.f32 0.17677669, %v424_v2  ;;  %v217_v6 = vmul.f32 0.17677669, %v425_v3  ;;  %295 = vmatpush.bf16.msra.mxu1 %v421_v22 }
  0x13   : > { %v218_v7 = vpack.c.bf16 %v217_v6, %v216_v5  ;;  %246 = vmatpush.bf16.msra.mxu0 %v419_v4 }
  0x16   : > { %407 = vmatmul.msk.bf16.vlgmr.msra.gmra.mxu0 %vm235_vm0, %v218_v7 }
  0x93   : > { %v248_v8 = vpop.f32.mrf.mxu0 }
  0x94   : > { %v254_v9 = vsel %vm253_vm1, %v248_v8, -inf }
  0x95   : > { %255 = vmax.xlane.f32.xlu0 %v254_v9 }
  0x9b   : > { %v250_v10 = vpop.f32.mrf.mxu0 }
  0x9c   : > { %v257_v11 = vsel %vm253_vm1, %v250_v10, -inf }
  0x9d   : > { %258 = vmax.xlane.f32.xlu0 %v257_v11 }
 0x108   : > { %v256_v12 = vpop.xlane.xlu0 %255 }
 0x109   : > { %v260_v13 = vsub.f32 %v248_v8, %v256_v12 }
 0x10b   : > { %v262_v14 = vmul.f32 1.442695, %v260_v13 }
 0x10d   : > { %434 = vpow2.f32 %v262_v14 }
 0x110   : > { %v259_v15 = vpop.xlane.xlu0 %258 }
 0x111   : > { %v261_v16 = vsub.f32 %v250_v10, %v259_v15 }
 0x113   : > { %v435_v17 = vpop.eup %434  ;;  %v264_v18 = vmul.f32 1.442695, %v261_v16 }
 0x114   : > { %v266_v19 = vsel %vm253_vm1, %v435_v17, 0.0 }
 0x115   : > { %436 = vpow2.f32 %v264_v18  ;;  %267 = vadd.xlane.f32.xlu1 %v266_v19 }
 0x11b   : > { %v437_v20 = vpop.eup %436 }
 0x11c   : > { %v269_v21 = vsel %vm253_vm1, %v437_v20, 0.0 }
 0x11d   : > { %270 = vadd.xlane.f32.xlu1 %v269_v21 }
 0x188   : > { %v268_v23 = vpop.xlane.xlu1 %267 }
 0x189   : > { %438 = vrcp.f32 %v268_v23 }
 0x18f   : > { %v439_v25 = vpop.eup %438 }
 0x190   : > { %v271_v24 = vpop.xlane.xlu1 %270  ;;  %v274_v27 = vmul.f32 %v439_v25, %v435_v17 }
 0x191   : > { %440 = vrcp.f32 %v271_v24 }
 0x197   : > { %v441_v26 = vpop.eup %440 }
 0x198   : > { %v275_v28 = vmul.f32 %v441_v26, %v437_v20 }
 0x19a   : > { %v276_v29 = vpack.c.bf16 %v275_v28, %v274_v27 }
 0x19c   : > { %412 = vmatmul.msk.bf16.vlgmr.msra.gmra.mxu1 %vm253_vm1, %v276_v29 }
 0x219   : > { %v297_v30 = vpop.f32.mrf.mxu1 }
 0x21a   : > { %v302_v31 = vpack.c.bf16 %v297_v30, %v297_v30 }
 0x21c   : > { %305 = vst.msk [vmem:[%s210_s27] sm:$0xf] %vm304_vm2, %v302_v31 }
 0x221   : > { %v299_v32 = vpop.f32.mrf.mxu1 }
 0x222   : > { %v303_v33 = vpack.c.bf16 %v299_v32, %v299_v32 }
 0x224   : > { %306 = vst.msk [vmem:[%s210_s27 + $0x4] sm:$0xf] %vm304_vm2, %v303_v33 }
 0x225 PF: > { %s13_s12 = sadd.s32 1, %s448_s12  }
 0x226   : > { %p10_p4 = scmp.ge.s32.totalorder %s13_s12, 10  }
 0x228   :  { %12 = sbr.rel (!%p10_p4) target bundleno = 1 (0x1), region = 68 }

// kernel: basic_transformer_forward.34
= control target key start
LH: loop header
LB: loop body
LE: loop exit
PB: predicated region body
PF: predicated region fallthrough
CT: control target
= control target key end

     0   :  { %v607_v6 = vmov 128.0   ;;  %s785_s0 = inlined_call_operand.vmem [shape: bf16[32,128], index: 0, kind: input, shape index: {}]   ;;  %s786_s1 = inlined_call_operand.vmem [shape: f32[1,128], index: 1, kind: input, shape index: {}]   ;;  %s787_s2 = inlined_call_operand.vmem [shape: f32[1,128], index: 2, kind: input, shape index: {}]   ;;  %s788_s3 = inlined_call_operand.vmem [shape: bf16[128,128], index: 3, kind: input, shape index: {}]   ;;  %s789_s4 = inlined_call_operand.vmem [shape: bf16[128,128], index: 4, kind: input, shape index: {}]   ;;  %s790_s5 = inlined_call_operand.vmem [shape: bf16[128,128], index: 5, kind: input, shape index: {}]   ;;  %s791_s6 = inlined_call_operand.vmem [shape: bf16[32,128], index: 6, kind: output, shape index: {0}]   ;;  %s792_s7 = inlined_call_operand.vmem [shape: bf16[32,128], index: 7, kind: output, shape index: {1}]   ;;  %s793_s8 = inlined_call_operand.vmem [shape: bf16[32,128], index: 8, kind: output, shape index: {2}]  }
   0x1   :  { %v582_v0 = vld [vmem:[%s785_s0 + $0x8] sm:$0xff]   ;;  %v545_v1 = vld [vmem:[%s785_s0] sm:$0xff]   ;;  %597 = vrcp.f32 %v607_v6  ;;  %v527_v29 = vld [vmem:[%s788_s3 + $0x38] sm:$0xff] }
   0x2   :  { %v550_v2 = vunpack.c.l.bf16 %v582_v0  ;;  %v546_v3 = vunpack.c.l.bf16 %v545_v1  ;;  %v551_v4 = vunpack.c.h.bf16 %v582_v0  ;;  %v547_v5 = vunpack.c.h.bf16 %v545_v1  ;;  %v535_v30 = vld [vmem:[%s789_s4 + $0x38] sm:$0xff]  ;;  %203 = vmatpush.bf16.msra.mxu0 %v527_v29  ;;  %586 = vmatpush.bf16.msra.mxu3 %v527_v29  ;;  %v526_v32 = vld [vmem:[%s788_s3 + $0x30] sm:$0xff]  ;;  %v525_v35 = vld [vmem:[%s788_s3 + $0x28] sm:$0xff] }
   0x3   :  { %v543_v31 = vld [vmem:[%s790_s5 + $0x38] sm:$0xff]  ;;  %294 = vmatpush.bf16.msra.mxu1 %v535_v30  ;;  %v534_v33 = vld [vmem:[%s789_s4 + $0x30] sm:$0xff]  ;;  %v533_v36 = vld [vmem:[%s789_s4 + $0x28] sm:$0xff] }
   0x4   :  { %40 = vadd.xlane.f32.xlu1 %v550_v2  ;;  %36 = vadd.xlane.f32.xlu0 %v546_v3  ;;  %v542_v34 = vld [vmem:[%s790_s5 + $0x30] sm:$0xff]  ;;  %v541_v37 = vld [vmem:[%s790_s5 + $0x28] sm:$0xff]  ;;  %v524_v38 = vld [vmem:[%s788_s3 + $0x20] sm:$0xff] }
   0x5   :  { %385 = vmatpush.bf16.msra.mxu2 %v543_v31  ;;  %v532_v39 = vld [vmem:[%s789_s4 + $0x20] sm:$0xff]  ;;  %v523_v41 = vld [vmem:[%s788_s3 + $0x18] sm:$0xff]  ;;  %v522_v44 = vld [vmem:[%s788_s3 + $0x10] sm:$0xff] }
   0x6   :  { %204 = vmatpush.bf16.msra.mxu0 %v526_v32  ;;  %587 = vmatpush.bf16.msra.mxu3 %v526_v32  ;;  %v540_v40 = vld [vmem:[%s790_s5 + $0x20] sm:$0xff]  ;;  %v531_v42 = vld [vmem:[%s789_s4 + $0x18] sm:$0xff]  ;;  %v530_v45 = vld [vmem:[%s789_s4 + $0x10] sm:$0xff] }
   0x7   :  { %v598_v7 = vpop.eup %597  ;;  %295 = vmatpush.bf16.msra.mxu1 %v534_v33  ;;  %v539_v43 = vld [vmem:[%s790_s5 + $0x18] sm:$0xff]  ;;  %v538_v46 = vld [vmem:[%s790_s5 + $0x10] sm:$0xff]  ;;  %v521_v47 = vld [vmem:[%s788_s3 + $0x8] sm:$0xff] }
   0x8   :  { %v45_v8 = vmul.f32 128.0, %v598_v7  ;;  %vm49_vm0 = vweird.f32 %v598_v7  ;;  %v529_v48 = vld [vmem:[%s789_s4 + $0x8] sm:$0xff]  ;;  %v520_v54 = vld [vmem:[%s788_s3] sm:$0xff] }
   0x9   :  { %386 = vmatpush.bf16.msra.mxu2 %v542_v34  ;;  %v537_v49 = vld [vmem:[%s790_s5 + $0x8] sm:$0xff]  ;;  %v528_v55 = vld [vmem:[%s789_s4] sm:$0xff] }
   0xa   :  { %v46_v9 = vsub.f32 1.0, %v45_v8  ;;  %205 = vmatpush.bf16.msra.mxu0 %v525_v35  ;;  %588 = vmatpush.bf16.msra.mxu3 %v525_v35  ;;  %v536_v56 = vld [vmem:[%s790_s5] sm:$0xff] }
   0xb   :  { %296 = vmatpush.bf16.msra.mxu1 %v533_v36  ;;  %v595_v30 = vld [vmem:[%s786_s1] ss:$0 sm:$0xff] }
   0xc   :  { %42 = vadd.xlane.f32.xlu1 %v551_v4  ;;  %38 = vadd.xlane.f32.xlu0 %v547_v5  ;;  %v47_v10 = vmul.f32 %v598_v7, %v46_v9 }
   0xd   :  { %387 = vmatpush.bf16.msra.mxu2 %v541_v37 }
   0xe   :  { %v48_v11 = vadd.f32 %v598_v7, %v47_v10  ;;  %206 = vmatpush.bf16.msra.mxu0 %v524_v38  ;;  %589 = vmatpush.bf16.msra.mxu3 %v524_v38 }
   0xf   :  { %297 = vmatpush.bf16.msra.mxu1 %v532_v39 }
  0x10   :  { %v659_v12 = vsel %vm49_vm0, %v598_v7, %v48_v11 }
  0x11   :  { %388 = vmatpush.bf16.msra.mxu2 %v540_v40 }
  0x12   :  { %207 = vmatpush.bf16.msra.mxu0 %v523_v41  ;;  %590 = vmatpush.bf16.msra.mxu3 %v523_v41 }
  0x13   :  { %298 = vmatpush.bf16.msra.mxu1 %v531_v42 }
  0x15   :  { %389 = vmatpush.bf16.msra.mxu2 %v539_v43 }
  0x16   :  { %208 = vmatpush.bf16.msra.mxu0 %v522_v44  ;;  %591 = vmatpush.bf16.msra.mxu3 %v522_v44 }
  0x17   :  { %299 = vmatpush.bf16.msra.mxu1 %v530_v45 }
  0x19   :  { %390 = vmatpush.bf16.msra.mxu2 %v538_v46 }
  0x1a   :  { %209 = vmatpush.bf16.msra.mxu0 %v521_v47  ;;  %592 = vmatpush.bf16.msra.mxu3 %v521_v47 }
  0x1b   :  { %300 = vmatpush.bf16.msra.mxu1 %v529_v48 }
  0x1d   :  { %391 = vmatpush.bf16.msra.mxu2 %v537_v49 }
  0x1e   :  { %210 = vmatpush.bf16.msra.mxu0 %v520_v54  ;;  %593 = vmatpush.bf16.msra.mxu3 %v520_v54 }
  0x1f   :  { %301 = vmatpush.bf16.msra.mxu1 %v528_v55 }
  0x21   :  { %392 = vmatpush.bf16.msra.mxu2 %v536_v56 }
  0x77   :  { %v41_v13 = vpop.xlane.xlu1 %40  ;;  %v37_v14 = vpop.xlane.xlu0 %36 }
  0x78   :  { %v53_v15 = vmul.f32 %v659_v12, %v41_v13  ;;  %v51_v16 = vmul.f32 %v659_v12, %v37_v14 }
  0x7a   :  { %v663_v17 = vsub.f32 %v550_v2, %v53_v15  ;;  %v665_v18 = vsub.f32 %v546_v3, %v51_v16 }
  0x7c   :  { %v61_v19 = vmul.f32 %v663_v17, %v663_v17  ;;  %v59_v20 = vmul.f32 %v665_v18, %v665_v18 }
  0x7e   :  { %67 = vadd.xlane.f32.xlu0 %v61_v19  ;;  %63 = vadd.xlane.f32.xlu2 %v59_v20 }
  0x7f   :  { %v43_v21 = vpop.xlane.xlu1 %42  ;;  %v39_v22 = vpop.xlane.xlu0 %38 }
  0x80   :  { %v54_v23 = vmul.f32 %v659_v12, %v43_v21  ;;  %v52_v24 = vmul.f32 %v659_v12, %v39_v22 }
  0x82   :  { %v673_v25 = vsub.f32 %v551_v4, %v54_v23  ;;  %v675_v26 = vsub.f32 %v547_v5, %v52_v24 }
  0x84   :  { %v62_v27 = vmul.f32 %v673_v25, %v673_v25  ;;  %v60_v28 = vmul.f32 %v675_v26, %v675_v26 }
  0x86   :  { %69 = vadd.xlane.f32.xlu1 %v62_v27  ;;  %65 = vadd.xlane.f32.xlu2 %v60_v28 }
  0xf1   :  { %v64_v50 = vpop.xlane.xlu2 %63  ;;  %v68_v51 = vpop.xlane.xlu0 %67 }
  0xf2   :  { %v71_v52 = vmul.f32 %v64_v50, %v659_v12  ;;  %v73_v53 = vmul.f32 %v68_v51, %v659_v12 }
  0xf4   :  { %v75_v57 = vadd.f32 1e-05, %v71_v52  ;;  %v77_v58 = vadd.f32 1e-05, %v73_v53 }
  0xf6   :  { %599 = vrsqrt.f32 %v75_v57  ;;  %vm105_vm1 = vweird.f32 %v77_v58  ;;  %vm85_vm5 = vweird.f32 %v75_v57 }
  0xf7   :  { %601 = vrsqrt.f32 %v77_v58 }
  0xf9   :  { %v70_v59 = vpop.xlane.xlu1 %69  ;;  %v66_v60 = vpop.xlane.xlu2 %65 }
  0xfa   :  { %v74_v61 = vmul.f32 %v70_v59, %v659_v12  ;;  %v72_v62 = vmul.f32 %v66_v60, %v659_v12 }
  0xfc   :  { %v600_v63 = vpop.eup %599  ;;  %v78_v0 = vadd.f32 1e-05, %v74_v61  ;;  %v76_v1 = vadd.f32 1e-05, %v72_v62 }
  0xfd   :  { %v602_v2 = vpop.eup %601  ;;  %v80_v3 = vmul.f32 %v600_v63, %v75_v57  ;;  %vm86_vm3 = vweird.f32 %v600_v63 }
  0xfe   :  { %v100_v4 = vmul.f32 %v602_v2, %v77_v58  ;;  %603 = vrsqrt.f32 %v78_v0  ;;  %vm106_vm2 = vweird.f32 %v602_v2  ;;  %vm87_vm6 = vmor %vm85_vm5, %vm86_vm3  ;;  %vm115_vm7 = vweird.f32 %v78_v0 }
  0xff   :  { %v81_v5 = vmul.f32 %v600_v63, %v80_v3  ;;  %605 = vrsqrt.f32 %v76_v1  ;;  %vm107_vm4 = vmor %vm105_vm1, %vm106_vm2  ;;  %vm95_vm11 = vweird.f32 %v76_v1 }
 0x100   :  { %v101_v6 = vmul.f32 %v602_v2, %v100_v4 }
 0x101   :  { %v82_v7 = vmul.f32 0.5, %v81_v5 }
 0x102   :  { %v102_v8 = vmul.f32 0.5, %v101_v6 }
 0x103   :  { %v83_v9 = vsub.f32 1.5, %v82_v7 }
 0x104   :  { %v604_v10 = vpop.eup %603  ;;  %v103_v11 = vsub.f32 1.5, %v102_v8 }
 0x105   :  { %v606_v13 = vpop.eup %605  ;;  %v110_v14 = vmul.f32 %v604_v10, %v78_v0  ;;  %v84_v12 = vmul.f32 %v600_v63, %v83_v9  ;;  %vm116_vm8 = vweird.f32 %v604_v10 }
 0x106   :  { %v104_v15 = vmul.f32 %v602_v2, %v103_v11  ;;  %v90_v16 = vmul.f32 %v606_v13, %v76_v1  ;;  %vm117_vm9 = vmor %vm115_vm7, %vm116_vm8  ;;  %vm96_vm10 = vweird.f32 %v606_v13 }
 0x107   :  { %v111_v19 = vmul.f32 %v604_v10, %v110_v14  ;;  %v88_v23 = vsel %vm87_vm6, %v600_v63, %v84_v12  ;;  %vm97_vm12 = vmor %vm95_vm11, %vm96_vm10 }
 0x108   :  { %v91_v20 = vmul.f32 %v606_v13, %v90_v16  ;;  %v108_v21 = vsel %vm107_vm4, %v602_v2, %v104_v15  ;;  %v119_v31 = vmul.f32 %v88_v23, %v665_v18 }
 0x109   :  { %v112_v22 = vmul.f32 0.5, %v111_v19  ;;  %v121_v28 = vmul.f32 %v108_v21, %v663_v17  ;;  %v596_v17 = vld [vmem:[%s787_s2] ss:$0 sm:$0xff] }
 0x10a   :  { %v92_v24 = vmul.f32 0.5, %v91_v20  ;;  %v126_v39 = vmul.f32 %v595_v30, %v119_v31 }
 0x10b   :  { %v113_v27 = vsub.f32 1.5, %v112_v22  ;;  %v128_v37 = vmul.f32 %v595_v30, %v121_v28 }
 0x10c   :  { %v93_v29 = vsub.f32 1.5, %v92_v24  ;;  %v133_v43 = vadd.f32 %v596_v17, %v126_v39 }
 0x10d   :  { %v114_v32 = vmul.f32 %v604_v10, %v113_v27  ;;  %v135_v42 = vadd.f32 %v596_v17, %v128_v37 }
 0x10e   :  { %v94_v33 = vmul.f32 %v606_v13, %v93_v29 }
 0x10f   :  { %v118_v34 = vsel %vm117_vm9, %v604_v10, %v114_v32 }
 0x110   :  { %v122_v35 = vmul.f32 %v118_v34, %v673_v25  ;;  %v98_v36 = vsel %vm97_vm12, %v606_v13, %v94_v33 }
 0x111   :  { %v120_v38 = vmul.f32 %v98_v36, %v675_v26 }
 0x112   :  { %v129_v40 = vmul.f32 %v595_v30, %v122_v35 }
 0x113   :  { %v127_v41 = vmul.f32 %v595_v30, %v120_v38 }
 0x114   :  { %v136_v18 = vadd.f32 %v596_v17, %v129_v40 }
 0x115   :  { %v134_v44 = vadd.f32 %v596_v17, %v127_v41 }
 0x116   :  { %v138_v45 = vpack.c.bf16 %v136_v18, %v135_v42 }
 0x117   :  { %v137_v46 = vpack.c.bf16 %v134_v44, %v133_v43 }
 0x118   :  { %216 = vmatmul.bf16.vlgmr.msra.gmra.mxu3 %v138_v45 }
 0x119   :  { %211 = vmatmul.bf16.vlgmr.msra.gmra.mxu0 %v137_v46  ;;  %302 = vmatmul.bf16.vlgmr.msra.gmra.mxu1 %v137_v46 }
 0x11a   :  { %393 = vmatmul.bf16.vlgmr.msra.gmra.mxu2 %v137_v46 }
 0x129   :  { %307 = vmatmul.bf16.gmra.mxu1 %v138_v45 }
 0x12a   :  { %398 = vmatmul.bf16.gmra.mxu2 %v138_v45 }
 0x196   :  { %v212_v25 = vpop.f32.mrf.mxu0  ;;  %v303_v47 = vpop.f32.mrf.mxu1 }
 0x19b   :  { %v217_v48 = vpop.f32.mrf.mxu3 }
 0x19d   :  { %v394_v49 = vpop.f32.mrf.mxu2 }
 0x19e   :  { %v214_v26 = vpop.f32.mrf.mxu0  ;;  %v305_v50 = vpop.f32.mrf.mxu1 }
 0x19f   :  { %v555_v51 = vpack.c.bf16 %v214_v26, %v212_v25  ;;  %v565_v52 = vpack.c.bf16 %v305_v50, %v303_v47 }
 0x1a1   :  { %556 = vst [vmem:[%s791_s6] sm:$0xff] %v555_v51  }
 0x1a2   :  { %566 = vst [vmem:[%s792_s7] sm:$0xff] %v565_v52  }
 0x1a3   :  { %v219_v53 = vpop.f32.mrf.mxu3 }
 0x1a4   :  { %v560_v54 = vpack.c.bf16 %v219_v53, %v217_v48 }
 0x1a5   :  { %v396_v55 = vpop.f32.mrf.mxu2 }
 0x1a6   :  { %583 = vst [vmem:[%s791_s6 + $0x8] sm:$0xff] %v560_v54   ;;  %v575_v56 = vpack.c.bf16 %v396_v55, %v394_v49  ;;  %v308_v57 = vpop.f32.mrf.mxu1 }
 0x1a8   :  { %576 = vst [vmem:[%s793_s8] sm:$0xff] %v575_v56  }
 0x1ad   :  { %v399_v58 = vpop.f32.mrf.mxu2 }
 0x1ae   :  { %v310_v59 = vpop.f32.mrf.mxu1 }
 0x1af   :  { %v570_v60 = vpack.c.bf16 %v310_v59, %v308_v57 }
 0x1b1   :  { %584 = vst [vmem:[%s792_s7 + $0x8] sm:$0xff] %v570_v60  }
 0x1b5   :  { %v401_v61 = vpop.f32.mrf.mxu2 }
 0x1b6   :  { %v580_v62 = vpack.c.bf16 %v401_v61, %v399_v58 }
 0x1b8   :  { %585 = vst [vmem:[%s793_s8 + $0x8] sm:$0xff] %v580_v62  }

// kernel: basic_transformer_forward.50
= control target key start
LH: loop header
LB: loop body
LE: loop exit
PB: predicated region body
PF: predicated region fallthrough
CT: control target
= control target key end

     0   :  { %vm121_vm0 = vcmask 257024   ;;  %s254_s1 = inlined_call_operand.vmem [shape: bf16[128,32], index: 1, kind: input, shape index: {}]   ;;  %s255_s2 = inlined_call_operand.vmem [shape: f32[1,32], index: 2, kind: input, shape index: {}]   ;;  %s256_s0 = inlined_call_operand.vmem [shape: bf16[32,128], index: 0, kind: input, shape index: {}]   ;;  %s257_s3 = inlined_call_operand.vmem [shape: bf16[32,32], index: 3, kind: output, shape index: {}]  }
   0x1   :  { %v179_v0 = vld [vmem:[%s254_s1 + $0x38] sm:$0xff]  ;;  %v178_v1 = vld [vmem:[%s254_s1 + $0x30] sm:$0xff]  ;;  %v177_v2 = vld [vmem:[%s254_s1 + $0x28] sm:$0xff] }
   0x2   :  { %98 = vmatpush.bf16.msra.mxu0 %v179_v0  ;;  %180 = vmatpush.bf16.msra.mxu1 %v179_v0  ;;  %v176_v3 = vld [vmem:[%s254_s1 + $0x20] sm:$0xff]  ;;  %v175_v4 = vld [vmem:[%s254_s1 + $0x18] sm:$0xff]  ;;  %v174_v5 = vld [vmem:[%s254_s1 + $0x10] sm:$0xff] }
   0x3   :  { %v173_v6 = vld [vmem:[%s254_s1 + $0x8] sm:$0xff]  ;;  %v172_v7 = vld [vmem:[%s254_s1] sm:$0xff] }
   0x4   :  { %v170_v8 = vld [vmem:[%s256_s0] sm:$0xff]  ;;  %v171_v9 = vld [vmem:[%s256_s0 + $0x8] sm:$0xff] }
   0x5   :  { %v188_v10 = vld [vmem:[%s255_s2] ss:$0 sm:$0xff] }
   0x6   :  { %99 = vmatpush.bf16.msra.mxu0 %v178_v1  ;;  %181 = vmatpush.bf16.msra.mxu1 %v178_v1 }
   0xa   :  { %100 = vmatpush.bf16.msra.mxu0 %v177_v2  ;;  %182 = vmatpush.bf16.msra.mxu1 %v177_v2 }
   0xe   :  { %101 = vmatpush.bf16.msra.mxu0 %v176_v3  ;;  %183 = vmatpush.bf16.msra.mxu1 %v176_v3 }
  0x12   :  { %102 = vmatpush.bf16.msra.mxu0 %v175_v4  ;;  %184 = vmatpush.bf16.msra.mxu1 %v175_v4 }
  0x16   :  { %103 = vmatpush.bf16.msra.mxu0 %v174_v5  ;;  %185 = vmatpush.bf16.msra.mxu1 %v174_v5 }
  0x1a   :  { %104 = vmatpush.bf16.msra.mxu0 %v173_v6  ;;  %186 = vmatpush.bf16.msra.mxu1 %v173_v6 }
  0x1e   :  { %105 = vmatpush.bf16.msra.mxu0 %v172_v7  ;;  %187 = vmatpush.bf16.msra.mxu1 %v172_v7 }
  0x21   :  { %106 = vmatmul.bf16.vlgmr.msra.gmra.mxu0 %v170_v8  ;;  %111 = vmatmul.bf16.vlgmr.msra.gmra.mxu1 %v171_v9 }
  0x9e   :  { %v107_v11 = vpop.f32.mrf.mxu0  ;;  %v112_v12 = vpop.f32.mrf.mxu1 }
  0x9f   :  { %v108_v13 = vadd.f32 %v188_v10, %v107_v11  ;;  %v113_v14 = vadd.f32 %v188_v10, %v112_v12 }
  0xa1   :  { %v117_v15 = vpack.c.bf16 %v108_v13, %v108_v13  ;;  %v119_v16 = vpack.c.bf16 %v113_v14, %v113_v14 }
  0xa3   :  { %122 = vst.msk [vmem:[%s257_s3] sm:$0xf] %vm121_vm0, %v117_v15 }
  0xa4   :  { %124 = vst.msk [vmem:[%s257_s3 + $0x8] sm:$0xf] %vm121_vm0, %v119_v16 }
  0xa6   :  { %v109_v17 = vpop.f32.mrf.mxu0  ;;  %v114_v18 = vpop.f32.mrf.mxu1 }
  0xa7   :  { %v110_v19 = vadd.f32 %v188_v10, %v109_v17  ;;  %v115_v20 = vadd.f32 %v188_v10, %v114_v18 }
  0xa9   :  { %v118_v21 = vpack.c.bf16 %v110_v19, %v110_v19  ;;  %v120_v22 = vpack.c.bf16 %v115_v20, %v115_v20 }
  0xab   :  { %123 = vst.msk [vmem:[%s257_s3 + $0x4] sm:$0xf] %vm121_vm0, %v118_v21 }
  0xac   :  { %125 = vst.msk [vmem:[%s257_s3 + $0xc] sm:$0xf] %vm121_vm0, %v120_v22 }

// kernel: basic_transformer_forward.51
= control target key start
LH: loop header
LB: loop body
LE: loop exit
PB: predicated region body
PF: predicated region fallthrough
CT: control target
= control target key end

     0   :  { %vm49_vm0 = vcmask 261120   ;;  %s164_s1 = inlined_call_operand.vmem [shape: bf16[32,128], index: 1, kind: input, shape index: {}]   ;;  %s165_s2 = inlined_call_operand.vmem [shape: f32[1,128], index: 2, kind: input, shape index: {}]   ;;  %s166_s0 = inlined_call_operand.vmem [shape: bf16[32,32], index: 0, kind: input, shape index: {}]   ;;  %s167_s3 = inlined_call_operand.vmem [shape: bf16[32,128], index: 3, kind: output, shape index: {}]  }
   0x1   :  { %v108_v0 = vld [vmem:[%s164_s1 + $0x8] sm:$0xff]  ;;  %v107_v1 = vld [vmem:[%s164_s1] sm:$0xff] }
   0x2   :  { %62 = vmatpush.bf16.msra.mxu0 %v108_v0  ;;  %120 = vmatpush.bf16.msra.mxu1 %v108_v0  ;;  %v105_v2 = vld [vmem:[%s166_s0] sm:$0xff]  ;;  %v106_v3 = vld [vmem:[%s166_s0 + $0x8] sm:$0xff] }
   0x3   :  { %v122_v6 = vld [vmem:[%s165_s2] ss:$0 sm:$0xff] }
   0x6   :  { %63 = vmatpush.bf16.msra.mxu0 %v107_v1  ;;  %121 = vmatpush.bf16.msra.mxu1 %v107_v1 }
   0x9   :  { %103 = vmatmul.msk.bf16.vlgmr.msra.gmra.mxu0 %vm49_vm0, %v105_v2  ;;  %104 = vmatmul.msk.bf16.vlgmr.msra.gmra.mxu1 %vm49_vm0, %v106_v3 }
  0x86   :  { %v65_v4 = vpop.f32.mrf.mxu0  ;;  %v70_v5 = vpop.f32.mrf.mxu1 }
  0x87   :  { %v66_v9 = vadd.f32 %v122_v6, %v65_v4  ;;  %v71_v10 = vadd.f32 %v122_v6, %v70_v5 }
  0x8e   :  { %v67_v7 = vpop.f32.mrf.mxu0  ;;  %v72_v8 = vpop.f32.mrf.mxu1 }
  0x8f   :  { %v68_v11 = vadd.f32 %v122_v6, %v67_v7  ;;  %v73_v12 = vadd.f32 %v122_v6, %v72_v8 }
  0x91   :  { %v112_v13 = vpack.c.bf16 %v68_v11, %v66_v9  ;;  %v117_v14 = vpack.c.bf16 %v73_v12, %v71_v10 }
  0x93   :  { %113 = vst [vmem:[%s167_s3] sm:$0xff] %v112_v13  }
  0x94   :  { %119 = vst [vmem:[%s167_s3 + $0x8] sm:$0xff] %v117_v14  }

// kernel: basic_transformer_forward.40
= control target key start
LH: loop header
LB: loop body
LE: loop exit
PB: predicated region body
PF: predicated region fallthrough
CT: control target
= control target key end

     0   :  { %v1249_v6 = vmov 128.0   ;;  %s2044_s0 = inlined_call_operand.vmem [shape: bf16[32,128], index: 0, kind: input, shape index: {}]   ;;  %s2045_s1 = inlined_call_operand.vmem [shape: f32[1,128], index: 1, kind: input, shape index: {}]   ;;  %s2046_s2 = inlined_call_operand.vmem [shape: f32[1,128], index: 2, kind: input, shape index: {}]   ;;  %s2047_s3 = inlined_call_operand.vmem [shape: bf16[128,512], index: 3, kind: input, shape index: {}]   ;;  %s2048_s5 = inlined_call_operand.vmem [shape: bf16[128,512], index: 5, kind: input, shape index: {}]   ;;  %s2049_s6 = inlined_call_operand.vmem [shape: f32[1,512], index: 6, kind: input, shape index: {}]   ;;  %s2050_s4 = inlined_call_operand.vmem [shape: f32[1,512], index: 4, kind: input, shape index: {}]   ;;  %s2051_s7 = inlined_call_operand.vmem [shape: bf16[32,512], index: 7, kind: output, shape index: {}]  }
   0x1   :  { %v1203_v0 = vld [vmem:[%s2044_s0 + $0x8] sm:$0xff]   ;;  %v1196_v1 = vld [vmem:[%s2044_s0] sm:$0xff]   ;;  %1207 = vrcp.f32 %v1249_v6  ;;  %v1161_v30 = vld [vmem:[%s2047_s3 + $0xec] sm:$0xf0] }
   0x2   :  { %v1201_v2 = vunpack.c.l.bf16 %v1203_v0  ;;  %v1197_v3 = vunpack.c.l.bf16 %v1196_v1  ;;  %v1202_v4 = vunpack.c.h.bf16 %v1203_v0  ;;  %v1198_v5 = vunpack.c.h.bf16 %v1196_v1  ;;  %v989_v29 = vld [vmem:[%s2047_s3 + $0xe0] sm:$0xf]  ;;  %v1159_v31 = vld [vmem:[%s2047_s3 + $0xe4] sm:$0xf]  ;;  %v991_v33 = vld [vmem:[%s2047_s3 + $0xf0] sm:$0xf0] }
   0x3   :  { %v990_v32 = vor.u32 %v1161_v30, %v989_v29  ;;  %v997_v34 = vld [vmem:[%s2047_s3 + $0xe8] sm:$0xf]  ;;  %v1162_v35 = vld [vmem:[%s2047_s3 + $0xf4] sm:$0xf0]  ;;  %v994_v36 = vor.u32 %v1159_v31, %v991_v33  ;;  %v1160_v38 = vld [vmem:[%s2047_s3 + $0xec] sm:$0xf] }
   0x4   :  { %40 = vadd.xlane.f32.xlu1 %v1201_v2  ;;  %36 = vadd.xlane.f32.xlu0 %v1197_v3  ;;  %v998_v37 = vor.u32 %v1162_v35, %v997_v34  ;;  %v999_v39 = vld [vmem:[%s2047_s3 + $0xf8] sm:$0xf0]  ;;  %v973_v41 = vld [vmem:[%s2047_s3 + $0xc0] sm:$0xf]  ;;  %v1157_v42 = vld [vmem:[%s2047_s3 + $0xcc] sm:$0xf0] }
   0x5   :  { %341 = vmatpush.bf16.msra.mxu0 %v990_v32  ;;  %v1002_v40 = vor.u32 %v1160_v38, %v999_v39  ;;  %360 = vmatpush.bf16.msra.mxu1 %v994_v36  ;;  %v1155_v43 = vld [vmem:[%s2047_s3 + $0xc4] sm:$0xf]  ;;  %v974_v44 = vor.u32 %v1157_v42, %v973_v41  ;;  %v975_v45 = vld [vmem:[%s2047_s3 + $0xd0] sm:$0xf0]  ;;  %v981_v46 = vld [vmem:[%s2047_s3 + $0xc8] sm:$0xf] }
   0x6   :  { %379 = vmatpush.bf16.msra.mxu2 %v998_v37  ;;  %v1158_v47 = vld [vmem:[%s2047_s3 + $0xd4] sm:$0xf0]  ;;  %v978_v48 = vor.u32 %v1155_v43, %v975_v45  ;;  %v1156_v50 = vld [vmem:[%s2047_s3 + $0xcc] sm:$0xf]  ;;  %v983_v51 = vld [vmem:[%s2047_s3 + $0xd8] sm:$0xf0] }
   0x7   :  { %v1208_v7 = vpop.eup %1207  ;;  %398 = vmatpush.bf16.msra.mxu3 %v1002_v40  ;;  %v982_v49 = vor.u32 %v1158_v47, %v981_v46  ;;  %v986_v52 = vor.u32 %v1156_v50, %v983_v51  ;;  %v957_v53 = vld [vmem:[%s2047_s3 + $0xa0] sm:$0xf]  ;;  %v1153_v54 = vld [vmem:[%s2047_s3 + $0xac] sm:$0xf0]  ;;  %v1151_v55 = vld [vmem:[%s2047_s3 + $0xa4] sm:$0xf] }
   0x8   :  { %v45_v8 = vmul.f32 128.0, %v1208_v7  ;;  %vm49_vm0 = vweird.f32 %v1208_v7  ;;  %v958_v56 = vor.u32 %v1153_v54, %v957_v53  ;;  %v959_v57 = vld [vmem:[%s2047_s3 + $0xb0] sm:$0xf0]  ;;  %v965_v58 = vld [vmem:[%s2047_s3 + $0xa8] sm:$0xf] }
   0x9   :  { %342 = vmatpush.bf16.msra.mxu0 %v974_v44  ;;  %361 = vmatpush.bf16.msra.mxu1 %v978_v48  ;;  %v1154_v59 = vld [vmem:[%s2047_s3 + $0xb4] sm:$0xf0]  ;;  %v962_v60 = vor.u32 %v1151_v55, %v959_v57  ;;  %v1152_v62 = vld [vmem:[%s2047_s3 + $0xac] sm:$0xf]  ;;  %v967_v63 = vld [vmem:[%s2047_s3 + $0xb8] sm:$0xf0] }
   0xa   :  { %v46_v9 = vsub.f32 1.0, %v45_v8  ;;  %380 = vmatpush.bf16.msra.mxu2 %v982_v49  ;;  %v966_v61 = vor.u32 %v1154_v59, %v965_v58  ;;  %v970_v0 = vor.u32 %v1152_v62, %v967_v63  ;;  %v941_v1 = vld [vmem:[%s2047_s3 + $0x80] sm:$0xf]  ;;  %v949_v6 = vld [vmem:[%s2047_s3 + $0x88] sm:$0xf] }
   0xb   :  { %399 = vmatpush.bf16.msra.mxu3 %v986_v52  ;;  %v909_v30 = vld [vmem:[%s2047_s3 + $0x40] sm:$0xf]  ;;  %v1141_v31 = vld [vmem:[%s2047_s3 + $0x4c] sm:$0xf0]  ;;  %v1139_v32 = vld [vmem:[%s2047_s3 + $0x44] sm:$0xf] }
   0xc   :  { %42 = vadd.xlane.f32.xlu1 %v1202_v4  ;;  %38 = vadd.xlane.f32.xlu0 %v1198_v5  ;;  %v47_v10 = vmul.f32 %v1208_v7, %v46_v9  ;;  %v910_v33 = vor.u32 %v1141_v31, %v909_v30  ;;  %v911_v34 = vld [vmem:[%s2047_s3 + $0x50] sm:$0xf0]  ;;  %v917_v35 = vld [vmem:[%s2047_s3 + $0x48] sm:$0xf]  ;;  %v1142_v36 = vld [vmem:[%s2047_s3 + $0x54] sm:$0xf0] }
   0xd   :  { %343 = vmatpush.bf16.msra.mxu0 %v958_v56  ;;  %362 = vmatpush.bf16.msra.mxu1 %v962_v60  ;;  %v914_v37 = vor.u32 %v1139_v32, %v911_v34  ;;  %v918_v38 = vor.u32 %v1142_v36, %v917_v35  ;;  %v1140_v39 = vld [vmem:[%s2047_s3 + $0x4c] sm:$0xf]  ;;  %v919_v40 = vld [vmem:[%s2047_s3 + $0x58] sm:$0xf0]  ;;  %v893_v42 = vld [vmem:[%s2047_s3 + $0x20] sm:$0xf] }
   0xe   :  { %v48_v11 = vadd.f32 %v1208_v7, %v47_v10  ;;  %381 = vmatpush.bf16.msra.mxu2 %v966_v61  ;;  %v1148_v10 = vld [vmem:[%s2047_s3 + $0x8c] sm:$0xf]  ;;  %v922_v41 = vor.u32 %v1140_v39, %v919_v40  ;;  %v1137_v43 = vld [vmem:[%s2047_s3 + $0x2c] sm:$0xf0]  ;;  %v1135_v44 = vld [vmem:[%s2047_s3 + $0x24] sm:$0xf] }
   0xf   :  { %400 = vmatpush.bf16.msra.mxu3 %v970_v0  ;;  %v894_v45 = vor.u32 %v1137_v43, %v893_v42  ;;  %v895_v46 = vld [vmem:[%s2047_s3 + $0x30] sm:$0xf0]  ;;  %v901_v47 = vld [vmem:[%s2047_s3 + $0x28] sm:$0xf]  ;;  %v1138_v48 = vld [vmem:[%s2047_s3 + $0x34] sm:$0xf0] }
  0x10   :  { %v1296_v12 = vsel %vm49_vm0, %v1208_v7, %v48_v11  ;;  %v1150_v7 = vld [vmem:[%s2047_s3 + $0x94] sm:$0xf0]  ;;  %v951_v11 = vld [vmem:[%s2047_s3 + $0x98] sm:$0xf0]  ;;  %v898_v51 = vor.u32 %v1135_v44, %v895_v46  ;;  %v902_v52 = vor.u32 %v1138_v48, %v901_v47  ;;  %v1136_v53 = vld [vmem:[%s2047_s3 + $0x2c] sm:$0xf] }
  0x11   :  { %v950_v9 = vor.u32 %v1150_v7, %v949_v6  ;;  %v903_v54 = vld [vmem:[%s2047_s3 + $0x38] sm:$0xf0]  ;;  %v877_v58 = vld [vmem:[%s2047_s3] sm:$0xf]  ;;  %v1133_v59 = vld [vmem:[%s2047_s3 + $0xc] sm:$0xf0] }
  0x12   :  { %v906_v57 = vor.u32 %v1136_v53, %v903_v54  ;;  %v1131_v60 = vld [vmem:[%s2047_s3 + $0x4] sm:$0xf]  ;;  %v878_v63 = vor.u32 %v1133_v59, %v877_v58  ;;  %v879_v0 = vld [vmem:[%s2047_s3 + $0x10] sm:$0xf0]  ;;  %v887_v6 = vld [vmem:[%s2047_s3 + $0x18] sm:$0xf0] }
  0x13   :  { %382 = vmatpush.bf16.msra.mxu2 %v950_v9  ;;  %v1194_v9 = vld [vmem:[%s2048_s5 + $0xf4] sm:$0xf0]  ;;  %v1188_v30 = vld [vmem:[%s2048_s5 + $0xcc] sm:$0xf]  ;;  %v1111_v31 = vld [vmem:[%s2048_s5 + $0xd8] sm:$0xf0] }
  0x14   :  { %v1114_v36 = vor.u32 %v1188_v30, %v1111_v31  ;;  %v1189_v39 = vld [vmem:[%s2048_s5 + $0xcc] sm:$0xf0]  ;;  %v1187_v40 = vld [vmem:[%s2048_s5 + $0xc4] sm:$0xf]  ;;  %v1093_v42 = vld [vmem:[%s2048_s5 + $0xa8] sm:$0xf] }
  0x15   :  { %v1186_v43 = vld [vmem:[%s2048_s5 + $0xb4] sm:$0xf0]  ;;  %v1184_v47 = vld [vmem:[%s2048_s5 + $0xac] sm:$0xf]  ;;  %v1095_v48 = vld [vmem:[%s2048_s5 + $0xb8] sm:$0xf0] }
  0x16   :  { %v1185_v53 = vld [vmem:[%s2048_s5 + $0xac] sm:$0xf0]  ;;  %v1183_v54 = vld [vmem:[%s2048_s5 + $0xa4] sm:$0xf]  ;;  %v1077_v58 = vld [vmem:[%s2048_s5 + $0x88] sm:$0xf] }
  0x77   :  { %v41_v13 = vpop.xlane.xlu1 %40  ;;  %v37_v14 = vpop.xlane.xlu0 %36 }
  0x78   :  { %v53_v15 = vmul.f32 %v1296_v12, %v41_v13  ;;  %v51_v16 = vmul.f32 %v1296_v12, %v37_v14  ;;  %v954_v13 = vor.u32 %v1148_v10, %v951_v11  ;;  %v925_v14 = vld [vmem:[%s2047_s3 + $0x60] sm:$0xf]  ;;  %v1192_v10 = vld [vmem:[%s2048_s5 + $0xec] sm:$0xf] }
  0x7a   :  { %v1300_v17 = vsub.f32 %v1201_v2, %v53_v15  ;;  %v1302_v18 = vsub.f32 %v1197_v3, %v51_v16  ;;  %v1149_v2 = vld [vmem:[%s2047_s3 + $0x8c] sm:$0xf0]  ;;  %v1147_v3 = vld [vmem:[%s2047_s3 + $0x84] sm:$0xf]  ;;  %401 = vmatpush.bf16.msra.mxu3 %v954_v13 }
  0x7b   :  { %v1145_v15 = vld [vmem:[%s2047_s3 + $0x6c] sm:$0xf0]  ;;  %v1143_v16 = vld [vmem:[%s2047_s3 + $0x64] sm:$0xf] }
  0x7c   :  { %v61_v19 = vmul.f32 %v1300_v17, %v1300_v17  ;;  %v59_v20 = vmul.f32 %v1302_v18, %v1302_v18 }
  0x7e   :  { %67 = vadd.xlane.f32.xlu0 %v61_v19  ;;  %63 = vadd.xlane.f32.xlu2 %v59_v20  ;;  %v926_v19 = vor.u32 %v1145_v15, %v925_v14  ;;  %v927_v20 = vld [vmem:[%s2047_s3 + $0x70] sm:$0xf0]  ;;  %v1127_v15 = vld [vmem:[%s2048_s5 + $0xf8] sm:$0xf0] }
  0x7f   :  { %v43_v21 = vpop.xlane.xlu1 %42  ;;  %v39_v22 = vpop.xlane.xlu0 %38 }
  0x80   :  { %v54_v23 = vmul.f32 %v1296_v12, %v43_v21  ;;  %v52_v24 = vmul.f32 %v1296_v12, %v39_v22  ;;  %v933_v21 = vld [vmem:[%s2047_s3 + $0x68] sm:$0xf]  ;;  %v1146_v22 = vld [vmem:[%s2047_s3 + $0x74] sm:$0xf0] }
  0x82   :  { %v1310_v25 = vsub.f32 %v1202_v4, %v54_v23  ;;  %v1312_v26 = vsub.f32 %v1198_v5, %v52_v24  ;;  %v942_v4 = vor.u32 %v1149_v2, %v941_v1  ;;  %v943_v5 = vld [vmem:[%s2047_s3 + $0x90] sm:$0xf0]  ;;  %v930_v23 = vor.u32 %v1143_v16, %v927_v20  ;;  %v885_v2 = vld [vmem:[%s2047_s3 + $0x8] sm:$0xf]  ;;  %v1117_v16 = vld [vmem:[%s2048_s5 + $0xe0] sm:$0xf] }
  0x83   :  { %v946_v8 = vor.u32 %v1147_v3, %v943_v5  ;;  %v934_v24 = vor.u32 %v1146_v22, %v933_v21  ;;  %v882_v1 = vor.u32 %v1131_v60, %v879_v0  ;;  %v1134_v3 = vld [vmem:[%s2047_s3 + $0x14] sm:$0xf0]  ;;  %v1130_v22 = vor.u32 %v1192_v10, %v1127_v15 }
  0x84   :  { %v62_v27 = vmul.f32 %v1310_v25, %v1310_v25  ;;  %v60_v28 = vmul.f32 %v1312_v26, %v1312_v26  ;;  %344 = vmatpush.bf16.msra.mxu0 %v942_v4  ;;  %v1132_v4 = vld [vmem:[%s2047_s3 + $0xc] sm:$0xf]  ;;  %v886_v5 = vor.u32 %v1134_v3, %v885_v2  ;;  %v1182_v60 = vld [vmem:[%s2048_s5 + $0x94] sm:$0xf0]  ;;  %v1079_v3 = vld [vmem:[%s2048_s5 + $0x98] sm:$0xf0] }
  0x85   :  { %363 = vmatpush.bf16.msra.mxu1 %v946_v8  ;;  %383 = vmatpush.bf16.msra.mxu2 %v934_v24  ;;  %v890_v7 = vor.u32 %v1132_v4, %v887_v6  ;;  %v1125_v8 = vld [vmem:[%s2048_s5 + $0xe8] sm:$0xf]  ;;  %v1191_v24 = vld [vmem:[%s2048_s5 + $0xe4] sm:$0xf]  ;;  %v1078_v2 = vor.u32 %v1182_v60, %v1077_v58  ;;  %v1069_v4 = vld [vmem:[%s2048_s5 + $0x80] sm:$0xf] }
  0x86   :  { %69 = vadd.xlane.f32.xlu1 %v62_v27  ;;  %65 = vadd.xlane.f32.xlu2 %v60_v28  ;;  %v1144_v27 = vld [vmem:[%s2047_s3 + $0x6c] sm:$0xf]  ;;  %v935_v28 = vld [vmem:[%s2047_s3 + $0x78] sm:$0xf0]  ;;  %v1126_v14 = vor.u32 %v1194_v9, %v1125_v8  ;;  %v1179_v8 = vld [vmem:[%s2048_s5 + $0x84] sm:$0xf] }
  0x87   :  { %v938_v29 = vor.u32 %v1144_v27, %v935_v28  ;;  %v1119_v27 = vld [vmem:[%s2048_s5 + $0xf0] sm:$0xf0]  ;;  %v1109_v28 = vld [vmem:[%s2048_s5 + $0xc8] sm:$0xf]  ;;  %v1726_v58 = vld [vmem:[%s2046_s2] ss:$0 sm:$0xff] }
  0x88   :  { %345 = vmatpush.bf16.msra.mxu0 %v926_v19  ;;  %v1193_v19 = vld [vmem:[%s2048_s5 + $0xec] sm:$0xf0]  ;;  %v1170_v60 = vld [vmem:[%s2048_s5 + $0x34] sm:$0xf0] }
  0x89   :  { %364 = vmatpush.bf16.msra.mxu1 %v930_v23  ;;  %402 = vmatpush.bf16.msra.mxu3 %v938_v29  ;;  %v1118_v23 = vor.u32 %v1193_v19, %v1117_v16  ;;  %v1122_v29 = vor.u32 %v1191_v24, %v1119_v27  ;;  %v1176_v24 = vld [vmem:[%s2048_s5 + $0x6c] sm:$0xf]  ;;  %v1165_v27 = vld [vmem:[%s2048_s5 + $0xc] sm:$0xf0] }
  0x8a   :  { %384 = vmatpush.bf16.msra.mxu2 %v918_v38 }
  0x8c   :  { %346 = vmatpush.bf16.msra.mxu0 %v910_v33 }
  0x8d   :  { %365 = vmatpush.bf16.msra.mxu1 %v914_v37  ;;  %403 = vmatpush.bf16.msra.mxu3 %v922_v41  ;;  %v1101_v37 = vld [vmem:[%s2048_s5 + $0xc0] sm:$0xf]  ;;  %v1103_v41 = vld [vmem:[%s2048_s5 + $0xd0] sm:$0xf0] }
  0x8e   :  { %385 = vmatpush.bf16.msra.mxu2 %v902_v52  ;;  %v1102_v46 = vor.u32 %v1189_v39, %v1101_v37  ;;  %v1085_v52 = vld [vmem:[%s2048_s5 + $0xa0] sm:$0xf]  ;;  %v1175_v37 = vld [vmem:[%s2048_s5 + $0x64] sm:$0xf] }
  0x90   :  { %347 = vmatpush.bf16.msra.mxu0 %v894_v45 }
  0x91   :  { %366 = vmatpush.bf16.msra.mxu1 %v898_v51  ;;  %404 = vmatpush.bf16.msra.mxu3 %v906_v57  ;;  %v1098_v51 = vor.u32 %v1184_v47, %v1095_v48  ;;  %v1087_v57 = vld [vmem:[%s2048_s5 + $0xb0] sm:$0xf0]  ;;  %v1172_v47 = vld [vmem:[%s2048_s5 + $0x4c] sm:$0xf] }
  0x92   :  { %386 = vmatpush.bf16.msra.mxu2 %v886_v5  ;;  %v1090_v59 = vor.u32 %v1183_v54, %v1087_v57  ;;  %v1029_v57 = vld [vmem:[%s2048_s5 + $0x28] sm:$0xf] }
  0x94   :  { %348 = vmatpush.bf16.msra.mxu0 %v878_v63  ;;  %v1180_v63 = vld [vmem:[%s2048_s5 + $0x8c] sm:$0xf] }
  0x95   :  { %367 = vmatpush.bf16.msra.mxu1 %v882_v1  ;;  %405 = vmatpush.bf16.msra.mxu3 %v890_v7  ;;  %v1082_v6 = vor.u32 %v1180_v63, %v1079_v3  ;;  %v1181_v7 = vld [vmem:[%s2048_s5 + $0x8c] sm:$0xf0]  ;;  %v1168_v63 = vld [vmem:[%s2048_s5 + $0x2c] sm:$0xf] }
  0x96   :  { %657 = vmatpush.bf16.msrb.mxu2 %v1126_v14 }
  0x98   :  { %619 = vmatpush.bf16.msrb.mxu0 %v1118_v23  ;;  %v1178_v23 = vld [vmem:[%s2048_s5 + $0x74] sm:$0xf0] }
  0x99   :  { %676 = vmatpush.bf16.msrb.mxu3 %v1130_v22  ;;  %638 = vmatpush.bf16.msrb.mxu1 %v1122_v29  ;;  %v1061_v22 = vld [vmem:[%s2048_s5 + $0x68] sm:$0xf]  ;;  %v1063_v29 = vld [vmem:[%s2048_s5 + $0x78] sm:$0xf0] }
  0x9c   :  { %620 = vmatpush.bf16.msrb.mxu0 %v1102_v46  ;;  %v1174_v46 = vld [vmem:[%s2048_s5 + $0x54] sm:$0xf0] }
  0x9d   :  { %677 = vmatpush.bf16.msrb.mxu3 %v1114_v36  ;;  %v1177_v36 = vld [vmem:[%s2048_s5 + $0x6c] sm:$0xf0] }
  0xa1   :  { %678 = vmatpush.bf16.msrb.mxu3 %v1098_v51  ;;  %v1037_v51 = vld [vmem:[%s2048_s5 + $0x40] sm:$0xf] }
  0xa5   :  { %679 = vmatpush.bf16.msrb.mxu3 %v1082_v6  ;;  %v1169_v6 = vld [vmem:[%s2048_s5 + $0x2c] sm:$0xf0] }
  0xf1   :  { %v64_v49 = vpop.xlane.xlu2 %63  ;;  %v68_v50 = vpop.xlane.xlu0 %67 }
  0xf2   :  { %v71_v55 = vmul.f32 %v64_v49, %v1296_v12  ;;  %v73_v56 = vmul.f32 %v68_v50, %v1296_v12  ;;  %v1106_v49 = vor.u32 %v1187_v40, %v1103_v41  ;;  %v1094_v50 = vor.u32 %v1186_v43, %v1093_v42  ;;  %v1055_v40 = vld [vmem:[%s2048_s5 + $0x70] sm:$0xf0]  ;;  %v1045_v41 = vld [vmem:[%s2048_s5 + $0x48] sm:$0xf] }
  0xf4   :  { %v1497_v61 = vadd.f32 1e-05, %v71_v55  ;;  %v1499_v62 = vadd.f32 1e-05, %v73_v56  ;;  %v1086_v56 = vor.u32 %v1185_v53, %v1085_v52  ;;  %639 = vmatpush.bf16.msrb.mxu1 %v1106_v49  ;;  %v1046_v49 = vor.u32 %v1174_v46, %v1045_v41  ;;  %v1173_v52 = vld [vmem:[%s2048_s5 + $0x4c] sm:$0xf0] }
  0xf6   :  { %1209 = vrsqrt.f32 %v1497_v61  ;;  %621 = vmatpush.bf16.msrb.mxu0 %v1086_v56  ;;  %vm85_vm2 = vweird.f32 %v1497_v61  ;;  %v1039_v56 = vld [vmem:[%s2048_s5 + $0x50] sm:$0xf0]  ;;  %vm105_vm9 = vweird.f32 %v1499_v62 }
  0xf7   :  { %1211 = vrsqrt.f32 %v1499_v62 }
  0xf8   :  { %640 = vmatpush.bf16.msrb.mxu1 %v1090_v59 }
  0xf9   :  { %v70_v11 = vpop.xlane.xlu1 %69  ;;  %v66_v13 = vpop.xlane.xlu2 %65 }
  0xfa   :  { %v74_v20 = vmul.f32 %v70_v11, %v1296_v12  ;;  %v72_v21 = vmul.f32 %v66_v13, %v1296_v12  ;;  %v1190_v12 = vld [vmem:[%s2048_s5 + $0xd4] sm:$0xf0]  ;;  %v1070_v11 = vor.u32 %v1181_v7, %v1069_v4  ;;  %v1071_v13 = vld [vmem:[%s2048_s5 + $0x90] sm:$0xf0]  ;;  %v1021_v4 = vld [vmem:[%s2048_s5 + $0x20] sm:$0xf] }
  0xfb   :  { %v1110_v35 = vor.u32 %v1190_v12, %v1109_v28  ;;  %v1074_v16 = vor.u32 %v1179_v8, %v1071_v13  ;;  %v1062_v28 = vor.u32 %v1178_v23, %v1061_v22  ;;  %v1053_v12 = vld [vmem:[%s2048_s5 + $0x60] sm:$0xf]  ;;  %v1167_v7 = vld [vmem:[%s2048_s5 + $0x24] sm:$0xf]  ;;  %v1013_v13 = vld [vmem:[%s2048_s5 + $0x8] sm:$0xf] }
  0xfc   :  { %v1556_v32 = vpop.eup %1209  ;;  %v1558_v33 = vadd.f32 1e-05, %v74_v20  ;;  %v1560_v34 = vadd.f32 1e-05, %v72_v21  ;;  %622 = vmatpush.bf16.msrb.mxu0 %v1070_v11  ;;  %v1023_v11 = vld [vmem:[%s2048_s5 + $0x30] sm:$0xf0] }
  0xfd   :  { %v80_v38 = vmul.f32 %v1556_v32, %v1497_v61  ;;  %v1583_v44 = vpop.eup %1211  ;;  %658 = vmatpush.bf16.msrb.mxu2 %v1110_v35  ;;  %vm86_vm1 = vweird.f32 %v1556_v32  ;;  %641 = vmatpush.bf16.msrb.mxu1 %v1074_v16  ;;  %v1066_v35 = vor.u32 %v1176_v24, %v1063_v29  ;;  %v1164_v16 = vld [vmem:[%s2048_s5 + $0xc] sm:$0xf]  ;;  %v1005_v22 = vld [vmem:[%s2048_s5] sm:$0xf] }
  0xfe   :  { %1213 = vrsqrt.f32 %v1558_v33  ;;  %v100_v1 = vmul.f32 %v1583_v44, %v1499_v62  ;;  %vm1654_vm3 = vmor %vm85_vm2, %vm86_vm1  ;;  %vm95_vm5 = vweird.f32 %v1560_v34  ;;  %vm115_vm7 = vweird.f32 %v1558_v33 }
  0xff   :  { %v81_v45 = vmul.f32 %v1556_v32, %v80_v38  ;;  %1215 = vrsqrt.f32 %v1560_v34  ;;  %v1679_v38 = vld [vmem:[%s2045_s1] ss:$0 sm:$0xff]  ;;  %680 = vmatpush.bf16.msrb.mxu3 %v1066_v35  ;;  %vm106_vm10 = vweird.f32 %v1583_v44  ;;  %v1006_v35 = vor.u32 %v1165_v27, %v1005_v22 }
 0x100   :  { %v101_v19 = vmul.f32 %v1583_v44, %v100_v1  ;;  %vm107_vm12 = vmor %vm105_vm9, %vm106_vm10 }
 0x101   :  { %v82_v55 = vmul.f32 0.5, %v81_v45  ;;  %659 = vmatpush.bf16.msrb.mxu2 %v1094_v50  ;;  %v1047_v50 = vld [vmem:[%s2048_s5 + $0x58] sm:$0xf0] }
 0x102   :  { %v1681_v39 = vmul.f32 0.5, %v101_v19  ;;  %v1050_v54 = vor.u32 %v1172_v47, %v1047_v50  ;;  %v1015_v19 = vld [vmem:[%s2048_s5 + $0x18] sm:$0xf0] }
 0x103   :  { %v83_v0 = vsub.f32 1.5, %v82_v55  ;;  %v1038_v55 = vor.u32 %v1173_v52, %v1037_v51  ;;  %v1018_v24 = vor.u32 %v1164_v16, %v1015_v19 }
 0x104   :  { %v1622_v5 = vpop.eup %1213  ;;  %681 = vmatpush.bf16.msrb.mxu3 %v1050_v54  ;;  %v449_v54 = vld [vmem:[%s2049_s6] sm:$0xf] }
 0x105   :  { %v1630_v9 = vpop.eup %1215  ;;  %v110_v10 = vmul.f32 %v1622_v5, %v1558_v33  ;;  %v84_v14 = vmul.f32 %v1556_v32, %v83_v0  ;;  %660 = vmatpush.bf16.msrb.mxu2 %v1078_v2  ;;  %v1031_v0 = vld [vmem:[%s2048_s5 + $0x38] sm:$0xf0]  ;;  %v1030_v2 = vor.u32 %v1170_v60, %v1029_v57  ;;  %vm116_vm8 = vweird.f32 %v1622_v5  ;;  %v171_v60 = vld [vmem:[%s2050_s4] sm:$0xf] }
 0x106   :  { %v90_v15 = vmul.f32 %v1630_v9, %v1560_v34  ;;  %vm96_vm4 = vweird.f32 %v1630_v9  ;;  %v1058_v34 = vor.u32 %v1175_v37, %v1055_v40  ;;  %v1034_v3 = vor.u32 %v1168_v63, %v1031_v0  ;;  %vm1790_vm11 = vmor %vm115_vm7, %vm116_vm8 }
 0x107   :  { %v111_v20 = vmul.f32 %v1622_v5, %v110_v10  ;;  %v88_v30 = vsel %vm1654_vm3, %v1556_v32, %v84_v14  ;;  %v1054_v32 = vor.u32 %v1177_v36, %v1053_v12  ;;  %vm1693_vm6 = vmor %vm95_vm5, %vm96_vm4  ;;  %v1166_v14 = vld [vmem:[%s2048_s5 + $0x14] sm:$0xf0] }
 0x108   :  { %v91_v21 = vmul.f32 %v1630_v9, %v90_v15  ;;  %v119_v48 = vmul.f32 %v88_v30, %v1302_v18  ;;  %642 = vmatpush.bf16.msrb.mxu1 %v1058_v34  ;;  %v1171_v18 = vld [vmem:[%s2048_s5 + $0x44] sm:$0xf]  ;;  %v103_v15 = vsub.f32 1.5, %v1681_v39  ;;  %682 = vmatpush.bf16.msrb.mxu3 %v1034_v3  ;;  %v1838_v3 = vperm.slane %v171_v60, 0 }
 0x109   :  { %v1658_v61 = vmul.f32 0.5, %v111_v20  ;;  %661 = vmatpush.bf16.msrb.mxu2 %v1062_v28  ;;  %623 = vmatpush.bf16.msrb.mxu0 %v1054_v32  ;;  %v1042_v59 = vor.u32 %v1171_v18, %v1039_v56  ;;  %v1007_v28 = vld [vmem:[%s2048_s5 + $0x10] sm:$0xf0]  ;;  %v1819_v18 = vperm.slane %v449_v54, 1 }
 0x10a   :  { %v92_v31 = vmul.f32 0.5, %v91_v21  ;;  %v126_v8 = vmul.f32 %v1679_v38, %v119_v48  ;;  %v1014_v21 = vor.u32 %v1166_v14, %v1013_v13  ;;  %v104_v30 = vmul.f32 %v1583_v44, %v103_v15 }
 0x10b   :  { %v113_v42 = vsub.f32 1.5, %v1658_v61  ;;  %v1163_v61 = vld [vmem:[%s2048_s5 + $0x4] sm:$0xf] }
 0x10c   :  { %v93_v43 = vsub.f32 1.5, %v92_v31  ;;  %643 = vmatpush.bf16.msrb.mxu1 %v1042_v59  ;;  %v133_v62 = vadd.f32 %v1726_v58, %v126_v8  ;;  %v1010_v36 = vor.u32 %v1163_v61, %v1007_v28  ;;  %683 = vmatpush.bf16.msrb.mxu3 %v1018_v24  ;;  %v108_v33 = vsel %vm107_vm12, %v1583_v44, %v104_v30 }
 0x10d   :  { %662 = vmatpush.bf16.msrb.mxu2 %v1046_v49  ;;  %624 = vmatpush.bf16.msrb.mxu0 %v1038_v55  ;;  %v114_v23 = vmul.f32 %v1622_v5, %v113_v42  ;;  %v121_v32 = vmul.f32 %v108_v33, %v1300_v17  ;;  %v1817_v55 = vperm.slane %v449_v54, 0 }
 0x10e   :  { %v94_v53 = vmul.f32 %v1630_v9, %v93_v43 }
 0x10f   :  { %v118_v37 = vsel %vm1790_vm11, %v1622_v5, %v114_v23  ;;  %v128_v41 = vmul.f32 %v1679_v38, %v121_v32 }
 0x110   :  { %v98_v1 = vsel %vm1693_vm6, %v1630_v9, %v94_v53  ;;  %v1022_v9 = vor.u32 %v1169_v6, %v1021_v4  ;;  %v122_v39 = vmul.f32 %v118_v37, %v1310_v25  ;;  %v1840_v4 = vperm.slane %v171_v60, 1 }
 0x111   :  { %v120_v10 = vmul.f32 %v98_v1, %v1312_v26  ;;  %v1026_v26 = vor.u32 %v1167_v7, %v1023_v11  ;;  %663 = vmatpush.bf16.msrb.mxu2 %v1030_v2  ;;  %v135_v5 = vadd.f32 %v1726_v58, %v128_v41  ;;  %v1842_v6 = vperm.slane %v449_v54, 2 }
 0x112   :  { %625 = vmatpush.bf16.msrb.mxu0 %v1022_v9  ;;  %v129_v40 = vmul.f32 %v1679_v38, %v122_v39  ;;  %v1844_v7 = vperm.slane %v449_v54, 3  ;;  %v1848_v9 = vperm.slane %v171_v60, 2  ;;  %v1850_v11 = vperm.slane %v171_v60, 3 }
 0x113   :  { %v127_v20 = vmul.f32 %v1679_v38, %v120_v10  ;;  %644 = vmatpush.bf16.msrb.mxu1 %v1026_v26 }
 0x114   :  { %v136_v42 = vadd.f32 %v1726_v58, %v129_v40 }
 0x115   :  { %v134_v12 = vadd.f32 %v1726_v58, %v127_v20  ;;  %664 = vmatpush.bf16.msrb.mxu2 %v1014_v21 }
 0x116   :  { %626 = vmatpush.bf16.msrb.mxu0 %v1006_v35  ;;  %v138_v43 = vpack.c.bf16 %v136_v42, %v135_v5 }
 0x117   :  { %v137_v31 = vpack.c.bf16 %v134_v12, %v133_v62  ;;  %645 = vmatpush.bf16.msrb.mxu1 %v1010_v36 }
 0x119   :  { %349 = vmatmul.bf16.vlgmr.msra.gmra.mxu0 %v137_v31  ;;  %368 = vmatmul.bf16.vlgmr.msra.gmra.mxu1 %v137_v31 }
 0x11a   :  { %387 = vmatmul.bf16.vlgmr.msra.gmra.mxu2 %v137_v31  ;;  %406 = vmatmul.bf16.vlgmr.msra.gmra.mxu3 %v137_v31 }
 0x129   :  { %354 = vmatmul.bf16.gmra.mxu0 %v138_v43  ;;  %373 = vmatmul.bf16.gmra.mxu1 %v138_v43 }
 0x12a   :  { %392 = vmatmul.bf16.gmra.mxu2 %v138_v43  ;;  %411 = vmatmul.bf16.gmra.mxu3 %v138_v43 }
 0x139   :  { %627 = vmatmul.bf16.vlgmr.msrb.gmra.mxu0 %v137_v31  ;;  %646 = vmatmul.bf16.vlgmr.msrb.gmra.mxu1 %v137_v31 }
 0x13a   :  { %665 = vmatmul.bf16.vlgmr.msrb.gmra.mxu2 %v137_v31  ;;  %684 = vmatmul.bf16.vlgmr.msrb.gmra.mxu3 %v137_v31 }
 0x149   :  { %632 = vmatmul.bf16.gmra.mxu0 %v138_v43  ;;  %651 = vmatmul.bf16.gmra.mxu1 %v138_v43 }
 0x14a   :  { %670 = vmatmul.bf16.gmra.mxu2 %v138_v43  ;;  %689 = vmatmul.bf16.gmra.mxu3 %v138_v43 }
 0x196   :  { %v350_v17 = vpop.f32.mrf.mxu0  ;;  %v369_v25 = vpop.f32.mrf.mxu1 }
 0x197   :  { %v1853_v16 = vadd.f32 %v350_v17, %v1838_v3  ;;  %v1856_v19 = vadd.f32 %v369_v25, %v1840_v4 }
 0x19d   :  { %v388_v44 = vpop.f32.mrf.mxu2  ;;  %v407_v38 = vpop.f32.mrf.mxu3 }
 0x19e   :  { %v352_v45 = vpop.f32.mrf.mxu0  ;;  %v371_v34 = vpop.f32.mrf.mxu1  ;;  %v1873_v62 = vadd.f32 %v388_v44, %v1848_v9  ;;  %v1876_v29 = vadd.f32 %v407_v38, %v1850_v11 }
 0x19f   :  { %v1887_v33 = vadd.f32 %v352_v45, %v1838_v3  ;;  %v1890_v39 = vadd.f32 %v371_v34, %v1840_v4 }
 0x1a5   :  { %v390_v46 = vpop.f32.mrf.mxu2  ;;  %v409_v47 = vpop.f32.mrf.mxu3 }
 0x1a6   :  { %v355_v48 = vpop.f32.mrf.mxu0  ;;  %v374_v49 = vpop.f32.mrf.mxu1  ;;  %v1895_v41 = vadd.f32 %v390_v46, %v1848_v9  ;;  %v1900_v43 = vadd.f32 %v409_v47, %v1850_v11 }
 0x1a7   :  { %v1903_v44 = vadd.f32 %v355_v48, %v1838_v3  ;;  %v1906_v38 = vadd.f32 %v374_v49, %v1840_v4 }
 0x1ad   :  { %v1806_v50 = vpop.f32.mrf.mxu2  ;;  %v1808_v51 = vpop.f32.mrf.mxu3 }
 0x1ae   :  { %v1810_v52 = vpop.f32.mrf.mxu0  ;;  %v1812_v53 = vpop.f32.mrf.mxu1 }
 0x1b5   :  { %v1821_v56 = vpop.f32.mrf.mxu2  ;;  %v1823_v57 = vpop.f32.mrf.mxu3 }
 0x1b6   :  { %v628_v58 = vpop.f32.mrf.mxu0  ;;  %v647_v59 = vpop.f32.mrf.mxu1 }
 0x1b7   :  { %v1829_v63 = vadd.f32 %v628_v58, %v1817_v55  ;;  %v1832_v0 = vadd.f32 %v647_v59, %v1819_v18 }
 0x1b9   :  { %v695_v1 = vmul.f32 %v1829_v63, %v1829_v63  ;;  %v696_v2 = vmul.f32 %v1832_v0, %v1832_v0 }
 0x1bb   :  { %v711_v8 = vmul.f32 %v695_v1, %v1829_v63  ;;  %v712_v10 = vmul.f32 %v696_v2, %v1832_v0 }
 0x1bd   :  { %v727_v13 = vmul.f32 0.044715, %v711_v8  ;;  %v728_v14 = vmul.f32 0.044715, %v712_v10  ;;  %v666_v15 = vpop.f32.mrf.mxu2  ;;  %v685_v26 = vpop.f32.mrf.mxu3 }
 0x1be   :  { %v1859_v20 = vadd.f32 %v666_v15, %v1842_v6  ;;  %v1862_v21 = vadd.f32 %v685_v26, %v1844_v7  ;;  %v630_v22 = vpop.f32.mrf.mxu0  ;;  %v649_v23 = vpop.f32.mrf.mxu1 }
 0x1bf   :  { %v743_v24 = vadd.f32 %v727_v13, %v1829_v63  ;;  %v744_v27 = vadd.f32 %v728_v14, %v1832_v0  ;;  %v1867_v61 = vadd.f32 %v630_v22, %v1817_v55  ;;  %v1870_v28 = vadd.f32 %v649_v23, %v1819_v18 }
 0x1c0   :  { %v697_v12 = vmul.f32 %v1859_v20, %v1859_v20  ;;  %v698_v30 = vmul.f32 %v1862_v21, %v1862_v21 }
 0x1c1   :  { %v759_v31 = vmul.f32 0.7978846, %v743_v24  ;;  %v760_v35 = vmul.f32 0.7978846, %v744_v27  ;;  %v699_v36 = vmul.f32 %v1867_v61, %v1867_v61  ;;  %v700_v37 = vmul.f32 %v1870_v28, %v1870_v28 }
 0x1c2   :  { %v713_v32 = vmul.f32 %v697_v12, %v1859_v20  ;;  %v714_v40 = vmul.f32 %v698_v30, %v1862_v21 }
 0x1c3   :  { %1217 = vtanh.f32 %v759_v31  ;;  %v715_v42 = vmul.f32 %v699_v36, %v1867_v61  ;;  %v716_v5 = vmul.f32 %v700_v37, %v1870_v28 }
 0x1c4   :  { %1219 = vtanh.f32 %v760_v35  ;;  %v729_v17 = vmul.f32 0.044715, %v713_v32  ;;  %v730_v25 = vmul.f32 0.044715, %v714_v40 }
 0x1c5   :  { %v731_v45 = vmul.f32 0.044715, %v715_v42  ;;  %v732_v34 = vmul.f32 0.044715, %v716_v5  ;;  %v668_v46 = vpop.f32.mrf.mxu2  ;;  %v687_v54 = vpop.f32.mrf.mxu3 }
 0x1c6   :  { %v745_v58 = vadd.f32 %v729_v17, %v1859_v20  ;;  %v746_v59 = vadd.f32 %v730_v25, %v1862_v21  ;;  %v1911_v47 = vadd.f32 %v668_v46, %v1842_v6  ;;  %v1914_v60 = vadd.f32 %v687_v54, %v1844_v7  ;;  %v633_v1 = vpop.f32.mrf.mxu0  ;;  %v652_v48 = vpop.f32.mrf.mxu1 }
 0x1c7   :  { %v747_v2 = vadd.f32 %v731_v45, %v1867_v61  ;;  %v748_v49 = vadd.f32 %v732_v34, %v1870_v28  ;;  %v1919_v8 = vadd.f32 %v633_v1, %v1817_v55  ;;  %v1922_v10 = vadd.f32 %v652_v48, %v1819_v18 }
 0x1c8   :  { %v761_v13 = vmul.f32 0.7978846, %v745_v58  ;;  %v762_v14 = vmul.f32 0.7978846, %v746_v59  ;;  %v701_v15 = vmul.f32 %v1911_v47, %v1911_v47  ;;  %v702_v26 = vmul.f32 %v1914_v60, %v1914_v60 }
 0x1c9   :  { %v1218_v22 = vpop.eup %1217  ;;  %v763_v23 = vmul.f32 0.7978846, %v747_v2  ;;  %v764_v24 = vmul.f32 0.7978846, %v748_v49  ;;  %v703_v27 = vmul.f32 %v1919_v8, %v1919_v8  ;;  %v704_v12 = vmul.f32 %v1922_v10, %v1922_v10 }
 0x1ca   :  { %v1220_v30 = vpop.eup %1219  ;;  %v791_v31 = vadd.f32 1.0, %v1218_v22  ;;  %1221 = vtanh.f32 %v761_v13  ;;  %v717_v35 = vmul.f32 %v701_v15, %v1911_v47  ;;  %v718_v36 = vmul.f32 %v702_v26, %v1914_v60 }
 0x1cb   :  { %v792_v37 = vadd.f32 1.0, %v1220_v30  ;;  %1223 = vtanh.f32 %v762_v14  ;;  %v719_v32 = vmul.f32 %v703_v27, %v1919_v8  ;;  %v720_v40 = vmul.f32 %v704_v12, %v1922_v10 }
 0x1cc   :  { %v807_v42 = vmul.f32 0.5, %v791_v31  ;;  %1225 = vtanh.f32 %v763_v23  ;;  %v733_v5 = vmul.f32 0.044715, %v717_v35  ;;  %v734_v17 = vmul.f32 0.044715, %v718_v36 }
 0x1cd   :  { %v808_v25 = vmul.f32 0.5, %v792_v37  ;;  %1227 = vtanh.f32 %v764_v24  ;;  %v735_v45 = vmul.f32 0.044715, %v719_v32  ;;  %v736_v34 = vmul.f32 0.044715, %v720_v40  ;;  %v671_v46 = vpop.f32.mrf.mxu2  ;;  %v690_v54 = vpop.f32.mrf.mxu3 }
 0x1ce   :  { %v823_v58 = vmul.f32 %v807_v42, %v1829_v63  ;;  %v749_v59 = vadd.f32 %v733_v5, %v1911_v47  ;;  %v750_v1 = vadd.f32 %v734_v17, %v1914_v60  ;;  %v1940_v48 = vadd.f32 %v671_v46, %v1842_v6  ;;  %v635_v5 = vpop.f32.mrf.mxu0 }
 0x1cf   :  { %v824_v2 = vmul.f32 %v808_v25, %v1832_v0  ;;  %v751_v49 = vadd.f32 %v735_v45, %v1919_v8  ;;  %v752_v13 = vadd.f32 %v736_v34, %v1922_v10  ;;  %v1946_v14 = vadd.f32 %v690_v54, %v1844_v7  ;;  %v654_v45 = vpop.f32.mrf.mxu1 }
 0x1d0   :  { %v1222_v15 = vpop.eup %1221  ;;  %v839_v26 = vmul.f32 %v823_v58, %v1853_v16  ;;  %v765_v63 = vmul.f32 0.7978846, %v749_v59  ;;  %v766_v22 = vmul.f32 0.7978846, %v750_v1  ;;  %v705_v23 = vmul.f32 %v1940_v48, %v1940_v48 }
 0x1d1   :  { %v1224_v24 = vpop.eup %1223  ;;  %v840_v27 = vmul.f32 %v824_v2, %v1856_v19  ;;  %v793_v12 = vadd.f32 1.0, %v1222_v15  ;;  %v767_v0 = vmul.f32 0.7978846, %v751_v49  ;;  %v768_v30 = vmul.f32 0.7978846, %v752_v13 }
 0x1d2   :  { %v1226_v31 = vpop.eup %1225  ;;  %v794_v35 = vadd.f32 1.0, %v1224_v24  ;;  %1229 = vtanh.f32 %v765_v63  ;;  %v721_v36 = vmul.f32 %v705_v23, %v1940_v48  ;;  %v706_v37 = vmul.f32 %v1946_v14, %v1946_v14 }
 0x1d3   :  { %v1228_v16 = vpop.eup %1227  ;;  %v855_v32 = vpack.c.bf16 %v840_v27, %v839_v26  ;;  %v809_v40 = vmul.f32 0.5, %v793_v12  ;;  %v795_v42 = vadd.f32 1.0, %v1226_v31  ;;  %1231 = vtanh.f32 %v766_v22 }
 0x1d4   :  { %v810_v17 = vmul.f32 0.5, %v794_v35  ;;  %v796_v25 = vadd.f32 1.0, %v1228_v16  ;;  %1233 = vtanh.f32 %v767_v0  ;;  %v737_v19 = vmul.f32 0.044715, %v721_v36 }
 0x1d5   :  { %863 = vst [vmem:[%s2051_s7] sm:$0xff] %v855_v32  ;;  %v825_v34 = vmul.f32 %v809_v40, %v1859_v20  ;;  %v811_v46 = vmul.f32 0.5, %v795_v42  ;;  %1235 = vtanh.f32 %v768_v30  ;;  %v722_v54 = vmul.f32 %v706_v37, %v1946_v14  ;;  %v673_v37 = vpop.f32.mrf.mxu2  ;;  %v692_v42 = vpop.f32.mrf.mxu3 }
 0x1d6   :  { %v826_v58 = vmul.f32 %v810_v17, %v1862_v21  ;;  %v812_v59 = vmul.f32 0.5, %v796_v25  ;;  %v753_v1 = vadd.f32 %v737_v19, %v1940_v48  ;;  %v1963_v2 = vadd.f32 %v635_v5, %v1817_v55 }
 0x1d7   :  { %v841_v49 = vmul.f32 %v825_v34, %v1873_v62  ;;  %v827_v13 = vmul.f32 %v811_v46, %v1867_v61  ;;  %v738_v15 = vmul.f32 0.044715, %v722_v54  ;;  %v1968_v26 = vadd.f32 %v654_v45, %v1819_v18 }
 0x1d8   :  { %v1230_v20 = vpop.eup %1229  ;;  %v842_v63 = vmul.f32 %v826_v58, %v1876_v29  ;;  %v828_v22 = vmul.f32 %v812_v59, %v1870_v28  ;;  %v769_v21 = vmul.f32 0.7978846, %v753_v1  ;;  %v707_v23 = vmul.f32 %v1963_v2, %v1963_v2 }
 0x1d9   :  { %v1232_v24 = vpop.eup %1231  ;;  %v843_v55 = vmul.f32 %v827_v13, %v1887_v33  ;;  %v797_v27 = vadd.f32 1.0, %v1230_v20  ;;  %v754_v62 = vadd.f32 %v738_v15, %v1946_v14  ;;  %v708_v61 = vmul.f32 %v1968_v26, %v1968_v26 }
 0x1da   :  { %v1234_v18 = vpop.eup %1233  ;;  %v856_v12 = vpack.c.bf16 %v842_v63, %v841_v49  ;;  %v844_v0 = vmul.f32 %v828_v22, %v1890_v39  ;;  %v798_v29 = vadd.f32 1.0, %v1232_v24  ;;  %1237 = vtanh.f32 %v769_v21 }
 0x1db   :  { %v1236_v28 = vpop.eup %1235  ;;  %v813_v30 = vmul.f32 0.5, %v797_v27  ;;  %v799_v31 = vadd.f32 1.0, %v1234_v18  ;;  %v770_v35 = vmul.f32 0.7978846, %v754_v62  ;;  %v723_v36 = vmul.f32 %v707_v23, %v1963_v2 }
 0x1dc   :  { %864 = vst [vmem:[%s2051_s7 + $0x8] sm:$0xff] %v856_v12  ;;  %v857_v33 = vpack.c.bf16 %v844_v0, %v843_v55  ;;  %v814_v16 = vmul.f32 0.5, %v798_v29  ;;  %v800_v32 = vadd.f32 1.0, %v1236_v28  ;;  %v724_v40 = vmul.f32 %v708_v61, %v1968_v26 }
 0x1dd   :  { %v829_v39 = vmul.f32 %v813_v30, %v1911_v47  ;;  %v815_v5 = vmul.f32 0.5, %v799_v31  ;;  %1239 = vtanh.f32 %v770_v35  ;;  %v739_v17 = vmul.f32 0.044715, %v723_v36 }
 0x1de   :  { %865 = vst [vmem:[%s2051_s7 + $0x10] sm:$0xff] %v857_v33  ;;  %v830_v25 = vmul.f32 %v814_v16, %v1914_v60  ;;  %v816_v19 = vmul.f32 0.5, %v800_v32  ;;  %v740_v45 = vmul.f32 0.044715, %v724_v40  ;;  %v1990_v34 = vadd.f32 %v673_v37, %v1842_v6 }
 0x1df   :  { %v845_v46 = vmul.f32 %v829_v39, %v1895_v41  ;;  %v831_v54 = vmul.f32 %v815_v5, %v1919_v8  ;;  %v755_v47 = vadd.f32 %v739_v17, %v1963_v2  ;;  %v1996_v58 = vadd.f32 %v692_v42, %v1844_v7 }
 0x1e0   :  { %v1238_v59 = vpop.eup %1237  ;;  %v846_v1 = vmul.f32 %v830_v25, %v1900_v43  ;;  %v832_v49 = vmul.f32 %v816_v19, %v1922_v10  ;;  %v756_v60 = vadd.f32 %v740_v45, %v1968_v26  ;;  %v709_v6 = vmul.f32 %v1990_v34, %v1990_v34 }
 0x1e1   :  { %v847_v13 = vmul.f32 %v831_v54, %v1903_v44  ;;  %v801_v41 = vadd.f32 1.0, %v1238_v59  ;;  %v771_v15 = vmul.f32 0.7978846, %v755_v47  ;;  %v710_v8 = vmul.f32 %v1996_v58, %v1996_v58 }
 0x1e2   :  { %v858_v20 = vpack.c.bf16 %v846_v1, %v845_v46  ;;  %v848_v7 = vmul.f32 %v832_v49, %v1906_v38  ;;  %v772_v63 = vmul.f32 0.7978846, %v756_v60  ;;  %v725_v43 = vmul.f32 %v709_v6, %v1990_v34 }
 0x1e3   :  { %v1240_v22 = vpop.eup %1239  ;;  %v817_v10 = vmul.f32 0.5, %v801_v41  ;;  %1241 = vtanh.f32 %v771_v15  ;;  %v726_v21 = vmul.f32 %v710_v8, %v1996_v58  ;;  %v394_v38 = vadd.f32 %v1806_v50, %v1848_v9 }
 0x1e4   :  { %866 = vst [vmem:[%s2051_s7 + $0x18] sm:$0xff] %v858_v20  ;;  %v859_v44 = vpack.c.bf16 %v848_v7, %v847_v13  ;;  %v802_v23 = vadd.f32 1.0, %v1240_v22  ;;  %1243 = vtanh.f32 %v772_v63  ;;  %v741_v24 = vmul.f32 0.044715, %v725_v43 }
 0x1e5   :  { %v833_v55 = vmul.f32 %v817_v10, %v1940_v48  ;;  %v742_v27 = vmul.f32 0.044715, %v726_v21  ;;  %v413_v12 = vadd.f32 %v1808_v51, %v1850_v11  ;;  %v358_v32 = vadd.f32 %v1810_v52, %v1838_v3 }
 0x1e6   :  { %867 = vst [vmem:[%s2051_s7 + $0x20] sm:$0xff] %v859_v44  ;;  %v818_v62 = vmul.f32 0.5, %v802_v23  ;;  %v757_v61 = vadd.f32 %v741_v24, %v1990_v34  ;;  %v396_v3 = vadd.f32 %v1821_v56, %v1848_v9 }
 0x1e7   :  { %v758_v18 = vadd.f32 %v742_v27, %v1996_v58  ;;  %v849_v0 = vmul.f32 %v833_v55, %v394_v38 }
 0x1e8   :  { %v834_v29 = vmul.f32 %v818_v62, %v1946_v14  ;;  %v773_v48 = vmul.f32 0.7978846, %v757_v61  ;;  %v377_v14 = vadd.f32 %v1812_v53, %v1840_v4  ;;  %v415_v4 = vadd.f32 %v1823_v57, %v1850_v11 }
 0x1e9   :  { %v1242_v28 = vpop.eup %1241  ;;  %v774_v30 = vmul.f32 0.7978846, %v758_v18 }
 0x1ea   :  { %v1244_v31 = vpop.eup %1243  ;;  %v850_v50 = vmul.f32 %v834_v29, %v413_v12  ;;  %v803_v35 = vadd.f32 1.0, %v1242_v28  ;;  %1245 = vtanh.f32 %v773_v48 }
 0x1eb   :  { %v804_v36 = vadd.f32 1.0, %v1244_v31  ;;  %1247 = vtanh.f32 %v774_v30 }
 0x1ec   :  { %v860_v37 = vpack.c.bf16 %v850_v50, %v849_v0  ;;  %v819_v33 = vmul.f32 0.5, %v803_v35 }
 0x1ed   :  { %v820_v16 = vmul.f32 0.5, %v804_v36 }
 0x1ee   :  { %868 = vst [vmem:[%s2051_s7 + $0x28] sm:$0xff] %v860_v37  ;;  %v835_v51 = vmul.f32 %v819_v33, %v1963_v2 }
 0x1ef   :  { %v836_v40 = vmul.f32 %v820_v16, %v1968_v26 }
 0x1f0   :  { %v1246_v42 = vpop.eup %1245  ;;  %v851_v39 = vmul.f32 %v835_v51, %v358_v32 }
 0x1f1   :  { %v1248_v5 = vpop.eup %1247  ;;  %v852_v17 = vmul.f32 %v836_v40, %v377_v14  ;;  %v805_v25 = vadd.f32 1.0, %v1246_v42 }
 0x1f2   :  { %v806_v19 = vadd.f32 1.0, %v1248_v5 }
 0x1f3   :  { %v861_v45 = vpack.c.bf16 %v852_v17, %v851_v39  ;;  %v821_v46 = vmul.f32 0.5, %v805_v25 }
 0x1f4   :  { %v822_v52 = vmul.f32 0.5, %v806_v19 }
 0x1f5   :  { %869 = vst [vmem:[%s2051_s7 + $0x30] sm:$0xff] %v861_v45  ;;  %v837_v53 = vmul.f32 %v821_v46, %v1990_v34 }
 0x1f6   :  { %v838_v2 = vmul.f32 %v822_v52, %v1996_v58 }
 0x1f7   :  { %v853_v26 = vmul.f32 %v837_v53, %v396_v3 }
 0x1f8   :  { %v854_v54 = vmul.f32 %v838_v2, %v415_v4 }
 0x1fa   :  { %v862_v47 = vpack.c.bf16 %v854_v54, %v853_v26 }
 0x1fc   :  { %870 = vst [vmem:[%s2051_s7 + $0x38] sm:$0xff] %v862_v47 }

// kernel: basic_transformer_forward.41
= control target key start
LH: loop header
LB: loop body
LE: loop exit
PB: predicated region body
PF: predicated region fallthrough
CT: control target
= control target key end

     0   :  { %s830_s1 = inlined_call_operand.vmem [shape: bf16[512,128], index: 1, kind: input, shape index: {}]   ;;  %s831_s2 = inlined_call_operand.vmem [shape: f32[1,128], index: 2, kind: input, shape index: {}]   ;;  %s832_s0 = inlined_call_operand.vmem [shape: bf16[32,512], index: 0, kind: input, shape index: {}]   ;;  %s833_s3 = inlined_call_operand.vmem [shape: bf16[32,128], index: 3, kind: input, shape index: {}]   ;;  %s834_s4 = inlined_call_operand.vmem [shape: bf16[32,128], index: 4, kind: output, shape index: {}]  }
   0x1   :  { %v600_v0 = vld [vmem:[%s830_s1 + $0x38] sm:$0xff]  ;;  %v599_v4 = vld [vmem:[%s830_s1 + $0x30] sm:$0xff]  ;;  %v598_v8 = vld [vmem:[%s830_s1 + $0x28] sm:$0xff] }
   0x2   :  { %v608_v1 = vld [vmem:[%s830_s1 + $0x78] sm:$0xff]  ;;  %325 = vmatpush.bf16.msra.mxu0 %v600_v0  ;;  %v607_v5 = vld [vmem:[%s830_s1 + $0x70] sm:$0xff]  ;;  %v606_v9 = vld [vmem:[%s830_s1 + $0x68] sm:$0xff] }
   0x3   :  { %v616_v2 = vld [vmem:[%s830_s1 + $0xb8] sm:$0xff]  ;;  %344 = vmatpush.bf16.msra.mxu1 %v608_v1  ;;  %v615_v6 = vld [vmem:[%s830_s1 + $0xb0] sm:$0xff]  ;;  %v614_v10 = vld [vmem:[%s830_s1 + $0xa8] sm:$0xff] }
   0x4   :  { %v624_v3 = vld [vmem:[%s830_s1 + $0xf8] sm:$0xff]  ;;  %363 = vmatpush.bf16.msra.mxu2 %v616_v2  ;;  %v623_v7 = vld [vmem:[%s830_s1 + $0xf0] sm:$0xff]  ;;  %v622_v11 = vld [vmem:[%s830_s1 + $0xe8] sm:$0xff] }
   0x5   :  { %382 = vmatpush.bf16.msra.mxu3 %v624_v3  ;;  %v597_v12 = vld [vmem:[%s830_s1 + $0x20] sm:$0xff]  ;;  %v596_v16 = vld [vmem:[%s830_s1 + $0x18] sm:$0xff]  ;;  %v595_v20 = vld [vmem:[%s830_s1 + $0x10] sm:$0xff] }
   0x6   :  { %326 = vmatpush.bf16.msra.mxu0 %v599_v4  ;;  %v605_v13 = vld [vmem:[%s830_s1 + $0x60] sm:$0xff]  ;;  %v604_v17 = vld [vmem:[%s830_s1 + $0x58] sm:$0xff]  ;;  %v603_v21 = vld [vmem:[%s830_s1 + $0x50] sm:$0xff] }
   0x7   :  { %345 = vmatpush.bf16.msra.mxu1 %v607_v5  ;;  %v613_v14 = vld [vmem:[%s830_s1 + $0xa0] sm:$0xff]  ;;  %v612_v18 = vld [vmem:[%s830_s1 + $0x98] sm:$0xff]  ;;  %v611_v22 = vld [vmem:[%s830_s1 + $0x90] sm:$0xff] }
   0x8   :  { %364 = vmatpush.bf16.msra.mxu2 %v615_v6  ;;  %v621_v15 = vld [vmem:[%s830_s1 + $0xe0] sm:$0xff]  ;;  %v620_v19 = vld [vmem:[%s830_s1 + $0xd8] sm:$0xff]  ;;  %v619_v23 = vld [vmem:[%s830_s1 + $0xd0] sm:$0xff] }
   0x9   :  { %383 = vmatpush.bf16.msra.mxu3 %v623_v7  ;;  %v594_v24 = vld [vmem:[%s830_s1 + $0x8] sm:$0xff]  ;;  %v593_v28 = vld [vmem:[%s830_s1] sm:$0xff]  ;;  %v587_v33 = vld [vmem:[%s832_s0 + $0xc] sm:$0xf0] }
   0xa   :  { %327 = vmatpush.bf16.msra.mxu0 %v598_v8  ;;  %v602_v25 = vld [vmem:[%s830_s1 + $0x48] sm:$0xff]  ;;  %v601_v29 = vld [vmem:[%s830_s1 + $0x40] sm:$0xff]  ;;  %v429_v35 = vld [vmem:[%s832_s0 + $0x10] sm:$0xf0] }
   0xb   :  { %346 = vmatpush.bf16.msra.mxu1 %v606_v9  ;;  %v610_v26 = vld [vmem:[%s830_s1 + $0x88] sm:$0xff]  ;;  %v609_v30 = vld [vmem:[%s830_s1 + $0x80] sm:$0xff]  ;;  %v588_v37 = vld [vmem:[%s832_s0 + $0x14] sm:$0xf0] }
   0xc   :  { %365 = vmatpush.bf16.msra.mxu2 %v614_v10  ;;  %v618_v27 = vld [vmem:[%s830_s1 + $0xc8] sm:$0xff]  ;;  %v617_v31 = vld [vmem:[%s830_s1 + $0xc0] sm:$0xff]  ;;  %v437_v39 = vld [vmem:[%s832_s0 + $0x18] sm:$0xf0] }
   0xd   :  { %384 = vmatpush.bf16.msra.mxu3 %v622_v11  ;;  %v427_v32 = vld [vmem:[%s832_s0] sm:$0xf]  ;;  %v585_v34 = vld [vmem:[%s832_s0 + $0x4] sm:$0xf]  ;;  %v435_v36 = vld [vmem:[%s832_s0 + $0x8] sm:$0xf] }
   0xe   :  { %328 = vmatpush.bf16.msra.mxu0 %v597_v12  ;;  %v586_v38 = vld [vmem:[%s832_s0 + $0xc] sm:$0xf]  ;;  %v428_v40 = vor.u32 %v587_v33, %v427_v32  ;;  %v432_v41 = vor.u32 %v585_v34, %v429_v35  ;;  %v436_v42 = vor.u32 %v588_v37, %v435_v36  ;;  %v443_v44 = vld [vmem:[%s832_s0 + $0x20] sm:$0xf]  ;;  %v591_v45 = vld [vmem:[%s832_s0 + $0x2c] sm:$0xf0] }
   0xf   :  { %347 = vmatpush.bf16.msra.mxu1 %v605_v13  ;;  %v440_v43 = vor.u32 %v586_v38, %v437_v39  ;;  %v589_v46 = vld [vmem:[%s832_s0 + $0x24] sm:$0xf]  ;;  %v445_v47 = vld [vmem:[%s832_s0 + $0x30] sm:$0xf0]  ;;  %v451_v48 = vld [vmem:[%s832_s0 + $0x28] sm:$0xf]  ;;  %v444_v52 = vor.u32 %v591_v45, %v443_v44 }
  0x10   :  { %366 = vmatpush.bf16.msra.mxu2 %v613_v14  ;;  %v592_v49 = vld [vmem:[%s832_s0 + $0x34] sm:$0xf0]  ;;  %v590_v50 = vld [vmem:[%s832_s0 + $0x2c] sm:$0xf]  ;;  %v453_v51 = vld [vmem:[%s832_s0 + $0x38] sm:$0xf0]  ;;  %v448_v53 = vor.u32 %v589_v46, %v445_v47 }
  0x11   :  { %385 = vmatpush.bf16.msra.mxu3 %v621_v15  ;;  %v452_v54 = vor.u32 %v592_v49, %v451_v48  ;;  %v456_v55 = vor.u32 %v590_v50, %v453_v51  ;;  %v645_v56 = vld [vmem:[%s831_s2] ss:$0 sm:$0xff] }
  0x12   :  { %329 = vmatpush.bf16.msra.mxu0 %v596_v16  ;;  %v626_v3 = vld [vmem:[%s833_s3] sm:$0xff]  }
  0x13   :  { %348 = vmatpush.bf16.msra.mxu1 %v604_v17  ;;  %v627_v8 = vunpack.c.l.bf16 %v626_v3  ;;  %v628_v10 = vunpack.c.h.bf16 %v626_v3 }
  0x14   :  { %367 = vmatpush.bf16.msra.mxu2 %v612_v18 }
  0x15   :  { %386 = vmatpush.bf16.msra.mxu3 %v620_v19 }
  0x16   :  { %330 = vmatpush.bf16.msra.mxu0 %v595_v20 }
  0x17   :  { %349 = vmatpush.bf16.msra.mxu1 %v603_v21 }
  0x18   :  { %368 = vmatpush.bf16.msra.mxu2 %v611_v22 }
  0x19   :  { %387 = vmatpush.bf16.msra.mxu3 %v619_v23 }
  0x1a   :  { %331 = vmatpush.bf16.msra.mxu0 %v594_v24  ;;  %v643_v24 = vld [vmem:[%s833_s3 + $0x8] sm:$0xff]  }
  0x1b   :  { %350 = vmatpush.bf16.msra.mxu1 %v602_v25 }
  0x1c   :  { %369 = vmatpush.bf16.msra.mxu2 %v610_v26 }
  0x1d   :  { %388 = vmatpush.bf16.msra.mxu3 %v618_v27 }
  0x1e   :  { %332 = vmatpush.bf16.msra.mxu0 %v593_v28 }
  0x1f   :  { %351 = vmatpush.bf16.msra.mxu1 %v601_v29  ;;  %v631_v29 = vunpack.c.l.bf16 %v643_v24 }
  0x20   :  { %370 = vmatpush.bf16.msra.mxu2 %v609_v30 }
  0x21   :  { %389 = vmatpush.bf16.msra.mxu3 %v617_v31  ;;  %333 = vmatmul.bf16.vlgmr.msra.gmra.mxu0 %v428_v40  ;;  %v632_v31 = vunpack.c.h.bf16 %v643_v24 }
  0x22   :  { %352 = vmatmul.bf16.vlgmr.msra.gmra.mxu1 %v432_v41 }
  0x23   :  { %371 = vmatmul.bf16.vlgmr.msra.gmra.mxu2 %v436_v42 }
  0x24   :  { %390 = vmatmul.bf16.vlgmr.msra.gmra.mxu3 %v440_v43 }
  0x31   :  { %338 = vmatmul.bf16.gmra.mxu0 %v444_v52 }
  0x32   :  { %357 = vmatmul.bf16.gmra.mxu1 %v448_v53 }
  0x33   :  { %376 = vmatmul.bf16.gmra.mxu2 %v452_v54 }
  0x34   :  { %395 = vmatmul.bf16.gmra.mxu3 %v456_v55 }
  0x9e   :  { %v334_v57 = vpop.f32.mrf.mxu0 }
  0x9f   :  { %v353_v58 = vpop.f32.mrf.mxu1  ;;  %v335_v59 = vadd.f32 %v645_v56, %v334_v57 }
  0xa1   :  { %v354_v62 = vadd.f32 %v353_v58, %v335_v59 }
  0xa6   :  { %v372_v60 = vpop.f32.mrf.mxu2  ;;  %v336_v63 = vpop.f32.mrf.mxu0 }
  0xa7   :  { %v391_v61 = vpop.f32.mrf.mxu3  ;;  %v355_v0 = vpop.f32.mrf.mxu1  ;;  %v337_v1 = vadd.f32 %v645_v56, %v336_v63  ;;  %v373_v2 = vadd.f32 %v372_v60, %v354_v62 }
  0xa9   :  { %v356_v4 = vadd.f32 %v355_v0, %v337_v1  ;;  %v392_v7 = vadd.f32 %v391_v61, %v373_v2 }
  0xab   :  { %v409_v14 = vadd.f32 %v627_v8, %v392_v7 }
  0xae   :  { %v374_v5 = vpop.f32.mrf.mxu2  ;;  %v339_v11 = vpop.f32.mrf.mxu0 }
  0xaf   :  { %v393_v6 = vpop.f32.mrf.mxu3  ;;  %v375_v9 = vadd.f32 %v374_v5, %v356_v4  ;;  %v358_v13 = vpop.f32.mrf.mxu1  ;;  %v340_v16 = vadd.f32 %v645_v56, %v339_v11 }
  0xb1   :  { %v394_v12 = vadd.f32 %v393_v6, %v375_v9  ;;  %v359_v20 = vadd.f32 %v358_v13, %v340_v16 }
  0xb3   :  { %v410_v15 = vadd.f32 %v628_v10, %v394_v12 }
  0xb5   :  { %v636_v17 = vpack.c.bf16 %v410_v15, %v409_v14 }
  0xb6   :  { %v377_v18 = vpop.f32.mrf.mxu2  ;;  %v341_v21 = vpop.f32.mrf.mxu0 }
  0xb7   :  { %v396_v19 = vpop.f32.mrf.mxu3  ;;  %637 = vst [vmem:[%s834_s4] sm:$0xff] %v636_v17   ;;  %v342_v22 = vadd.f32 %v645_v56, %v341_v21  ;;  %v378_v23 = vadd.f32 %v377_v18, %v359_v20  ;;  %v360_v25 = vpop.f32.mrf.mxu1 }
  0xb9   :  { %v361_v26 = vadd.f32 %v360_v25, %v342_v22  ;;  %v397_v28 = vadd.f32 %v396_v19, %v378_v23 }
  0xbb   :  { %v411_v34 = vadd.f32 %v631_v29, %v397_v28 }
  0xbe   :  { %v379_v27 = vpop.f32.mrf.mxu2 }
  0xbf   :  { %v380_v30 = vadd.f32 %v379_v27, %v361_v26  ;;  %v398_v32 = vpop.f32.mrf.mxu3 }
  0xc1   :  { %v399_v33 = vadd.f32 %v398_v32, %v380_v30 }
  0xc3   :  { %v412_v35 = vadd.f32 %v632_v31, %v399_v33 }
  0xc5   :  { %v641_v36 = vpack.c.bf16 %v412_v35, %v411_v34 }
  0xc7   :  { %644 = vst [vmem:[%s834_s4 + $0x8] sm:$0xff] %v641_v36  }

</bundles_post_ra>
